<compile_context>
chip_gen: v6e
topology: v6e:2x2x1
jax: 0.10.0
libtpu: 0.0.40
codegen_flags: <defaults>
</compile_context>

<pallas_src>
import functools

import jax
import jax.numpy as jnp
from jax import lax
from jax.experimental import pallas as pl
from jax.experimental.pallas import tpu as pltpu


def _round_up(x, m):
    return ((x + m - 1) // m) * m


def _gcn_kernel(x_ref, a_ref, w_ref, b_ref, o_ref, parts_ref, *,
                support_len, order, c_in):
    """Fused graph diffusion + single stacked 1x1-conv projection.

    x_ref:     (C, bb, Vp)      input block; b = flattened (batch, time),
                                minor (lane) dim = padded node dim Vp
    a_ref:     (S, Vp, Vp)      stacked, zero-padded adjacency supports
    w_ref:     (c_out, K*C)     1x1-conv weight, K = order*S + 1
    b_ref:     (c_out, 1, 1)    bias
    o_ref:     (c_out, bb, Vp)  output block: o[o, (n,l), v] == y[n, o, v, l]
    parts_ref: (K*C, bb, Vp)    VMEM staging scratch for all diffusion parts
    """
    C = c_in
    cdtype = parts_ref.dtype

    x = x_ref[...].astype(cdtype)                 # (C, bb, Vp)

    # Part 0 is the input itself (matches torch's `out = [x]`).
    parts_ref[pl.ds(0, C)] = x

    # Diffusion: (C, bb, Vp) . (Vp, Vp), contracting the minor node dim
    # -> one fused (C*bb, Vp) @ (Vp, Vp) MXU matmul per hop (lane contraction).
    dn_diff = (((2,), (0,)), ((), ()))

    k = 1
    for s in range(support_len):
        a = a_ref[s]                              # (Vp, Vp)
        p = x
        for _ in range(order):
            p = lax.dot_general(
                p, a, dn_diff,
                preferred_element_type=jnp.float32).astype(cdtype)
            parts_ref[pl.ds(k * C, C)] = p
            k += 1

    # Single fused projection over the stacked channel dim (contraction K*C):
    # (c_out, K*C) . (K*C, bb, Vp) -> (c_out, bb, Vp), accumulated in f32.
    dn_proj = (((1,), (0,)), ((), ()))
    y = lax.dot_general(w_ref[...], parts_ref[...], dn_proj,
                        preferred_element_type=jnp.float32)

    # F.dropout(h, p, training=False) -> identity.
    o_ref[...] = (y + b_ref[...]).astype(o_ref.dtype)


def gcn_forward(x, supports, weight, bias, *, order=2,
                compute_dtype=jnp.float32, bb=128, vmem_limit_bytes=None):
    """Forward pass of the ST-AE `gcn` module (eval mode).

    x:        (N, C, V, L)
    supports: (S, V, V)
    weight:   (c_out, (order*S + 1) * C)   squeezed 1x1 Conv2d weight
    bias:     (c_out,)
    Returns   (N, c_out, V, L) in x.dtype.

    compute_dtype: jnp.bfloat16 recommended on v5e/v6e/v7x for MXU throughput
                   (f32 accumulation kept via preferred_element_type);
                   float32 gives exact parity with the PyTorch module.
    bb:            block size over the folded b = (batch*time) dim.
                   Guidance: v7x (64 MiB VMEM) ~64-128; v6e (128 MiB) ~128-256;
                   v5e prefer bf16 and the smaller end.  Clamped to B for
                   toy shapes.
    """
    N, C, V, L = x.shape
    S = supports.shape[0]
    c_out, c_total = weight.shape
    K = order * S + 1
    assert c_total == K * C, "weight does not match (order*support_len+1)*c_in"

    B = N * L
    # Sublane alignment of the second-to-last block dim: 16 rows for bf16
    # (vreg sublane packing), 8 for f32.
    sub = 16 if jnp.dtype(compute_dtype) == jnp.dtype(jnp.bfloat16) else 8
    # Pick the number of grid blocks, then balance bb so padding waste is small.
    n_blocks = max(1, pl.cdiv(B, max(bb, sub)))
    bb = _round_up(pl.cdiv(B, n_blocks), sub)
    Bp = bb * n_blocks

    # Lane-dense node dim: pad V up to a multiple of 128.
    Vp = _round_up(V, 128)

    # Layout plumbing (outside the kernel, pure XLA):
    #   fold batch & time into one parallel dim b=(n,l); nodes v stay minor so
    #   the diffusion contraction lands on the lane dim; zero-pad b and v.
    x_d = jnp.transpose(x, (1, 0, 3, 2)).reshape(C, B, V)
    x_d = jnp.pad(x_d, ((0, 0), (0, Bp - B), (0, Vp - V))).astype(compute_dtype)
    a_d = jnp.pad(supports, ((0, 0), (0, Vp - V), (0, Vp - V))).astype(compute_dtype)
    w_d = weight.astype(compute_dtype)                    # (c_out, K*C)
    b3 = bias.reshape(c_out, 1, 1).astype(jnp.float32)

    csize = jnp.dtype(compute_dtype).itemsize
    osize = jnp.dtype(x.dtype).itemsize

    # Per-block VMEM footprint (double-buffered streams + scratch + f32 result).
    est = (2 * C * bb * Vp * csize                 # x input stream
           + 2 * c_out * bb * Vp * osize           # output stream
           + K * C * bb * Vp * csize               # parts staging scratch
           + 2 * (S * Vp * Vp + c_out * K * C) * csize   # supports + weight
           + c_out * bb * Vp * 4)                  # f32 projection result
    if vmem_limit_bytes is None:
        # Raise the scoped limit only as far as needed; cap well below v5e/v6e
        # physical VMEM.  On v7x (64 MiB physical) prefer shrinking `bb`.
        vmem_limit_bytes = int(min(max(est * 5 // 4 + (2 << 20), 32 << 20),
                                   96 << 20))

    flops = (2 * S * order * C * Bp * Vp * Vp            # diffusion hops
             + 2 * c_out * K * C * Bp * Vp)              # fused projection
    bytes_accessed = (C * Bp * Vp * csize + S * Vp * Vp * csize
                      + c_out * K * C * csize + c_out * Bp * Vp * osize)

    kernel = functools.partial(_gcn_kernel, support_len=S, order=order, c_in=C)

    out = pl.pallas_call(
        kernel,
        out_shape=jax.ShapeDtypeStruct((c_out, Bp, Vp), x.dtype),
        grid=(n_blocks,),
        in_specs=[
            pl.BlockSpec((C, bb, Vp), lambda g: (0, g, 0)),
            pl.BlockSpec((S, Vp, Vp), lambda g: (0, 0, 0)),
            pl.BlockSpec((c_out, K * C), lambda g: (0, 0)),
            pl.BlockSpec((c_out, 1, 1), lambda g: (0, 0, 0)),
        ],
        out_specs=pl.BlockSpec((c_out, bb, Vp), lambda g: (0, g, 0)),
        scratch_shapes=[pltpu.VMEM((K * C, bb, Vp), compute_dtype)],
        compiler_params=pltpu.CompilerParams(
            dimension_semantics=("parallel",),
            vmem_limit_bytes=vmem_limit_bytes,
        ),
        cost_estimate=pl.CostEstimate(
            flops=int(flops), transcendentals=0,
            bytes_accessed=int(bytes_accessed)),
    )(x_d, a_d, w_d, b3)

    # (c_out, Bp, Vp) -> drop padding -> (N, c_out, V, L)
    out = out[:, :B, :V]
    return jnp.transpose(out.reshape(c_out, N, L, V), (1, 0, 3, 2))


def gcn_reference(x, supports, weight, bias, *, order=2):
    """Pure-JAX reference mirroring the PyTorch forward (dropout in eval mode)."""
    out = [x]
    for s in range(supports.shape[0]):
        a = supports[s]
        x1 = jnp.einsum("ncvl,vw->ncwl", x, a)
        out.append(x1)
        for _ in range(2, order + 1):
            x2 = jnp.einsum("ncvl,vw->ncwl", x1, a)
            out.append(x2)
            x1 = x2
    h = jnp.concatenate(out, axis=1)  # (N, C_total, V, L)
    y = jnp.einsum("oc,ncvl->novl", weight, h) + bias[None, :, None, None]
    return y


if __name__ == "__main__":
    key = jax.random.PRNGKey(0)

    # Small shapes consistent with the module
    N, C_IN, V, L = 2, 4, 16, 8     # batch, in-channels, nodes, seq
    C_OUT = 32
    SUPPORT_LEN = 3
    ORDER = 2
    C_TOTAL = (ORDER * SUPPORT_LEN + 1) * C_IN  # 28

    k_x, k_a, k_w, k_b = jax.random.split(key, 4)
    x = jax.random.normal(k_x, (N, C_IN, V, L), dtype=jnp.float32)
    supports = jax.random.uniform(k_a, (SUPPORT_LEN, V, V), dtype=jnp.float32)
    # row-normalize adjacencies (typical GCN supports), deterministic
    supports = supports / jnp.sum(supports, axis=-1, keepdims=True)

    # Conv2d(c_total, c_out, kernel_size=(1,1), bias=True) parameters (squeezed)
    weight = 0.1 * jax.random.normal(k_w, (C_OUT, C_TOTAL), dtype=jnp.float32)
    bias = 0.1 * jax.random.normal(k_b, (C_OUT,), dtype=jnp.float32)

    y_ref = gcn_reference(x, supports, weight, bias, order=ORDER)

    # --- f32 path, fully fused (single grid block) ---
    y = gcn_forward(x, supports, weight, bias, order=ORDER,
                    compute_dtype=jnp.float32)
    y = jax.block_until_ready(y)
    assert y.shape == (N, C_OUT, V, L)
    assert jnp.allclose(y, y_ref, atol=2e-3, rtol=2e-3), \
        "f32 kernel mismatch vs reference"

    # --- f32 path, tiled over the folded (n,l) dim (exercises the grid path) ---
    y_tiled = gcn_forward(x, supports, weight, bias, order=ORDER,
                          compute_dtype=jnp.float32, bb=8)
    y_tiled = jax.block_until_ready(y_tiled)
    assert jnp.allclose(y_tiled, y_ref, atol=2e-3, rtol=2e-3), \
        "tiled f32 kernel mismatch vs reference"

    # --- bf16-operand path (all TPU generations), vs. bf16-cast reference ---
    y_bf16 = gcn_forward(x, supports, weight, bias, order=ORDER,
                         compute_dtype=jnp.bfloat16)
    y_bf16 = jax.block_until_ready(y_bf16)
    cast = lambda a: a.astype(jnp.bfloat16).astype(jnp.float32)
    y_ref_bf16 = gcn_reference(cast(x), cast(supports), cast(weight), bias,
                               order=ORDER)
    assert jnp.allclose(y_bf16, y_ref_bf16, atol=5e-2, rtol=5e-2), \
        "bf16 kernel mismatch vs bf16-cast reference"

    print("KERNEL_OK")
</pallas_src>

<mosaic_0001>
module attributes {stable_mosaic.version = 11 : i64} {
  func.func @_gcn_kernel(%arg0: i32, %arg1: memref<4x16x128xf32, #tpu.memory_space<vmem>>, %arg2: memref<3x128x128xf32, #tpu.memory_space<vmem>>, %arg3: memref<32x28xf32, #tpu.memory_space<vmem>>, %arg4: memref<32x1x1xf32, #tpu.memory_space<vmem>>, %arg5: memref<32x16x128xf32, #tpu.memory_space<vmem>>, %arg6: memref<28x16x128xf32, #tpu.memory_space<vmem>>) attributes {dimension_semantics = [#tpu.dimension_semantics<parallel>], iteration_bounds = array<i64: 1>, scalar_prefetch = 0 : i64, scratch_operands = 1 : i64, tpu.core_type = #tpu.core_type<tc>, window_params = [{transform_indices = @transform_0, window_bounds = array<i64: 4, 16, 128>}, {pipeline_mode = #tpu.pipeline_mode<synchronous>, transform_indices = @transform_1, window_bounds = array<i64: 3, 128, 128>}, {pipeline_mode = #tpu.pipeline_mode<synchronous>, transform_indices = @transform_2, window_bounds = array<i64: 32, 28>}, {pipeline_mode = #tpu.pipeline_mode<synchronous>, transform_indices = @transform_3, window_bounds = array<i64: 32, 1, 1>}, {transform_indices = @transform_4, window_bounds = array<i64: 32, 16, 128>}]} {
    %c0 = arith.constant 0 : index
    %c0_0 = arith.constant 0 : index
    %c0_1 = arith.constant 0 : index
    %0 = vector.load %arg1[%c0, %c0_0, %c0_1] : memref<4x16x128xf32, #tpu.memory_space<vmem>>, vector<4x16x128xf32>
    %c0_2 = arith.constant 0 : index
    %c0_3 = arith.constant 0 : index
    %c0_4 = arith.constant 0 : index
    %1 = vector.load %arg6[%c0_2, %c0_3, %c0_4] : memref<28x16x128xf32, #tpu.memory_space<vmem>>, vector<4x16x128xf32>
    tpu.vector_store %arg6[%c0_2, %c0_3, %c0_4], %0 {strides = array<i32>} : memref<28x16x128xf32, #tpu.memory_space<vmem>>, vector<4x16x128xf32>,
    %c0_5 = arith.constant 0 : index
    %c0_6 = arith.constant 0 : index
    %c0_7 = arith.constant 0 : index
    %2 = vector.load %arg2[%c0_5, %c0_6, %c0_7] : memref<3x128x128xf32, #tpu.memory_space<vmem>>, vector<1x128x128xf32>
    %3 = vector.shape_cast %2 : vector<1x128x128xf32> to vector<128x128xf32>
    %cst = arith.constant dense<0.000000e+00> : vector<4x16x128xf32>
    %4 = tpu.matmul %0, %3, %cst {dimension_numbers = #tpu.dot_dimension_numbers<[2], [0], [0, 1], [1], [0, 0, 0, 1, 1, 1], [], []>} : vector<4x16x128xf32>, vector<128x128xf32>, vector<4x16x128xf32> -> vector<4x16x128xf32>
    %c4 = arith.constant 4 : index
    %c0_8 = arith.constant 0 : index
    %c0_9 = arith.constant 0 : index
    %5 = vector.load %arg6[%c4, %c0_8, %c0_9] : memref<28x16x128xf32, #tpu.memory_space<vmem>>, vector<4x16x128xf32>
    tpu.vector_store %arg6[%c4, %c0_8, %c0_9], %4 {strides = array<i32>} : memref<28x16x128xf32, #tpu.memory_space<vmem>>, vector<4x16x128xf32>,
    %cst_10 = arith.constant dense<0.000000e+00> : vector<4x16x128xf32>
    %6 = tpu.matmul %4, %3, %cst_10 {dimension_numbers = #tpu.dot_dimension_numbers<[2], [0], [0, 1], [1], [0, 0, 0, 1, 1, 1], [], []>} : vector<4x16x128xf32>, vector<128x128xf32>, vector<4x16x128xf32> -> vector<4x16x128xf32>
    %c8 = arith.constant 8 : index
    %c0_11 = arith.constant 0 : index
    %c0_12 = arith.constant 0 : index
    %7 = vector.load %arg6[%c8, %c0_11, %c0_12] : memref<28x16x128xf32, #tpu.memory_space<vmem>>, vector<4x16x128xf32>
    tpu.vector_store %arg6[%c8, %c0_11, %c0_12], %6 {strides = array<i32>} : memref<28x16x128xf32, #tpu.memory_space<vmem>>, vector<4x16x128xf32>,
    %c1 = arith.constant 1 : index
    %c0_13 = arith.constant 0 : index
    %c0_14 = arith.constant 0 : index
    %8 = vector.load %arg2[%c1, %c0_13, %c0_14] : memref<3x128x128xf32, #tpu.memory_space<vmem>>, vector<1x128x128xf32>
    %9 = vector.shape_cast %8 : vector<1x128x128xf32> to vector<128x128xf32>
    %cst_15 = arith.constant dense<0.000000e+00> : vector<4x16x128xf32>
    %10 = tpu.matmul %0, %9, %cst_15 {dimension_numbers = #tpu.dot_dimension_numbers<[2], [0], [0, 1], [1], [0, 0, 0, 1, 1, 1], [], []>} : vector<4x16x128xf32>, vector<128x128xf32>, vector<4x16x128xf32> -> vector<4x16x128xf32>
    %c12 = arith.constant 12 : index
    %c0_16 = arith.constant 0 : index
    %c0_17 = arith.constant 0 : index
    %11 = vector.load %arg6[%c12, %c0_16, %c0_17] : memref<28x16x128xf32, #tpu.memory_space<vmem>>, vector<4x16x128xf32>
    tpu.vector_store %arg6[%c12, %c0_16, %c0_17], %10 {strides = array<i32>} : memref<28x16x128xf32, #tpu.memory_space<vmem>>, vector<4x16x128xf32>,
    %cst_18 = arith.constant dense<0.000000e+00> : vector<4x16x128xf32>
    %12 = tpu.matmul %10, %9, %cst_18 {dimension_numbers = #tpu.dot_dimension_numbers<[2], [0], [0, 1], [1], [0, 0, 0, 1, 1, 1], [], []>} : vector<4x16x128xf32>, vector<128x128xf32>, vector<4x16x128xf32> -> vector<4x16x128xf32>
    %c16 = arith.constant 16 : index
    %c0_19 = arith.constant 0 : index
    %c0_20 = arith.constant 0 : index
    %13 = vector.load %arg6[%c16, %c0_19, %c0_20] : memref<28x16x128xf32, #tpu.memory_space<vmem>>, vector<4x16x128xf32>
    tpu.vector_store %arg6[%c16, %c0_19, %c0_20], %12 {strides = array<i32>} : memref<28x16x128xf32, #tpu.memory_space<vmem>>, vector<4x16x128xf32>,
    %c2 = arith.constant 2 : index
    %c0_21 = arith.constant 0 : index
    %c0_22 = arith.constant 0 : index
    %14 = vector.load %arg2[%c2, %c0_21, %c0_22] : memref<3x128x128xf32, #tpu.memory_space<vmem>>, vector<1x128x128xf32>
    %15 = vector.shape_cast %14 : vector<1x128x128xf32> to vector<128x128xf32>
    %cst_23 = arith.constant dense<0.000000e+00> : vector<4x16x128xf32>
    %16 = tpu.matmul %0, %15, %cst_23 {dimension_numbers = #tpu.dot_dimension_numbers<[2], [0], [0, 1], [1], [0, 0, 0, 1, 1, 1], [], []>} : vector<4x16x128xf32>, vector<128x128xf32>, vector<4x16x128xf32> -> vector<4x16x128xf32>
    %c20 = arith.constant 20 : index
    %c0_24 = arith.constant 0 : index
    %c0_25 = arith.constant 0 : index
    %17 = vector.load %arg6[%c20, %c0_24, %c0_25] : memref<28x16x128xf32, #tpu.memory_space<vmem>>, vector<4x16x128xf32>
    tpu.vector_store %arg6[%c20, %c0_24, %c0_25], %16 {strides = array<i32>} : memref<28x16x128xf32, #tpu.memory_space<vmem>>, vector<4x16x128xf32>,
    %cst_26 = arith.constant dense<0.000000e+00> : vector<4x16x128xf32>
    %18 = tpu.matmul %16, %15, %cst_26 {dimension_numbers = #tpu.dot_dimension_numbers<[2], [0], [0, 1], [1], [0, 0, 0, 1, 1, 1], [], []>} : vector<4x16x128xf32>, vector<128x128xf32>, vector<4x16x128xf32> -> vector<4x16x128xf32>
    %c24 = arith.constant 24 : index
    %c0_27 = arith.constant 0 : index
    %c0_28 = arith.constant 0 : index
    %19 = vector.load %arg6[%c24, %c0_27, %c0_28] : memref<28x16x128xf32, #tpu.memory_space<vmem>>, vector<4x16x128xf32>
    tpu.vector_store %arg6[%c24, %c0_27, %c0_28], %18 {strides = array<i32>} : memref<28x16x128xf32, #tpu.memory_space<vmem>>, vector<4x16x128xf32>,
    %c0_29 = arith.constant 0 : index
    %c0_30 = arith.constant 0 : index
    %20 = vector.load %arg3[%c0_29, %c0_30] : memref<32x28xf32, #tpu.memory_space<vmem>>, vector<32x28xf32>
    %c0_31 = arith.constant 0 : index
    %c0_32 = arith.constant 0 : index
    %c0_33 = arith.constant 0 : index
    %21 = vector.load %arg6[%c0_31, %c0_32, %c0_33] : memref<28x16x128xf32, #tpu.memory_space<vmem>>, vector<28x16x128xf32>
    %cst_34 = arith.constant dense<0.000000e+00> : vector<32x16x128xf32>
    %22 = tpu.matmul %20, %21, %cst_34 {dimension_numbers = #tpu.dot_dimension_numbers<[1], [0], [0], [1, 2], [0, 0, 1, 1, 1, 2], [], []>} : vector<32x28xf32>, vector<28x16x128xf32>, vector<32x16x128xf32> -> vector<32x16x128xf32>
    %c0_35 = arith.constant 0 : index
    %c0_36 = arith.constant 0 : index
    %c0_37 = arith.constant 0 : index
    %23 = vector.load %arg4[%c0_35, %c0_36, %c0_37] : memref<32x1x1xf32, #tpu.memory_space<vmem>>, vector<32x1x1xf32>
    %24 = vector.broadcast %23 : vector<32x1x1xf32> to vector<32x16x128xf32>
    %25 = arith.addf %22, %24 : vector<32x16x128xf32>
    %c0_38 = arith.constant 0 : index
    %c0_39 = arith.constant 0 : index
    %c0_40 = arith.constant 0 : index
    %26 = vector.load %arg5[%c0_38, %c0_39, %c0_40] : memref<32x16x128xf32, #tpu.memory_space<vmem>>, vector<32x16x128xf32>
    tpu.vector_store %arg5[%c0_38, %c0_39, %c0_40], %25 {strides = array<i32>} : memref<32x16x128xf32, #tpu.memory_space<vmem>>, vector<32x16x128xf32>,
    return
  }
  func.func @transform_0(%arg0: i32) -> (i32, i32, i32) {
    %c0_i32 = arith.constant 0 : i32
    %c0_i32_0 = arith.constant 0 : i32
    %c0_i32_1 = arith.constant 0 : i32
    return %c0_i32, %arg0, %c0_i32_0 : i32, i32, i32
  }
  func.func @transform_1(%arg0: i32) -> (i32, i32, i32) {
    %c0_i32 = arith.constant 0 : i32
    %c0_i32_0 = arith.constant 0 : i32
    %c0_i32_1 = arith.constant 0 : i32
    %c0_i32_2 = arith.constant 0 : i32
    return %c0_i32, %c0_i32_0, %c0_i32_1 : i32, i32, i32
  }
  func.func @transform_2(%arg0: i32) -> (i32, i32) {
    %c0_i32 = arith.constant 0 : i32
    %c0_i32_0 = arith.constant 0 : i32
    %c0_i32_1 = arith.constant 0 : i32
    return %c0_i32, %c0_i32_0 : i32, i32
  }
  func.func @transform_3(%arg0: i32) -> (i32, i32, i32) {
    %c0_i32 = arith.constant 0 : i32
    %c0_i32_0 = arith.constant 0 : i32
    %c0_i32_1 = arith.constant 0 : i32
    %c0_i32_2 = arith.constant 0 : i32
    return %c0_i32, %c0_i32_0, %c0_i32_1 : i32, i32, i32
  }
  func.func @transform_4(%arg0: i32) -> (i32, i32, i32) {
    %c0_i32 = arith.constant 0 : i32
    %c0_i32_0 = arith.constant 0 : i32
    %c0_i32_1 = arith.constant 0 : i32
    return %c0_i32, %arg0, %c0_i32_0 : i32, i32, i32
  }
}

</mosaic_0001>

<bundles_post_ra>
// kernel: tpu_custom_call.1
= control target key start
LH: loop header
LB: loop body
LE: loop exit
PB: predicated region body
PF: predicated region fallthrough
CT: control target
= control target key end

     0   :  { %9 = vsyncpa [#allocation4], 0  ;;  %s6871_s0 = inlined_call_operand.hbm [shape: f32[4,16,128], index: 0, kind: input, shape index: {}]   ;;  %s6872_s1 = inlined_call_operand.hbm [shape: f32[3,128,128], index: 1, kind: input, shape index: {}]   ;;  %s6873_s2 = inlined_call_operand.vmem [shape: f32[32,28], index: 2, kind: input, shape index: {}]   ;;  %s6874_s3 = inlined_call_operand.vmem [shape: f32[32,1,1], index: 3, kind: input, shape index: {}]   ;;  %s6875_s4 = inlined_call_operand.hbm [shape: f32[32,16,128], index: 4, kind: output, shape index: {}]  }
   0x1   :  { %10 = vsyncpa [#allocation7], 0 }
   0x2   :  { %11 = vsyncpa [#allocation5], 0  ;;  %s5186_s15 = smov [#allocation3]  }
   0x3   :  { %s17_s16 = sshll.u32 %s5186_s15, 4  ;;  %s18_s16 = int_to_ptr.vmem [resolvable:$true] %s17_s16 }
   0x4   :  { %s5128_s17 = scalar_lea.vmem %s18_s16, 1024  ;;  %p5133_p1 = scmp.lt.s32.totalorder %s18_s16, %s18_s16 }
   0x5   :  { %p5129_p0 = scmp.ne.s32.totalorder %s18_s16, %s5128_s17  ;;  %p5134_p2 = scmp.lt.s32.totalorder %s5128_s17, %s5128_s17 }
   0x7   :  { %p5135_p3 = por %p5134_p2, %p5133_p1 }
   0x9   :  { %p5136_p4 = pnand %p5135_p3, %p5129_p0 }
   0xb   :  { %5139 = shalt.err (!%p5136_p4)
}
   0xc   :  { %s5187_s18 = smov 128   ;;  %s5188_s19 = smov 8  }
   0xd   :  { %23 = dma.hbm_to_vmem [thread:$0]  %s6871_s0, 1024, %s18_s16, [#allocation4], %s5187_s18, %s5187_s18, %s5188_s19  }
   0xe   :  { %s5189_s22 = smov [#allocation6]  }
   0xf   :  { %s29_s23 = sshll.u32 %s5189_s22, 4  ;;  %s30_s23 = int_to_ptr.vmem [resolvable:$true] %s29_s23 }
  0x10   :  { %s5148_s24 = scalar_lea.vmem %s30_s23, 6144  ;;  %p5153_p6 = scmp.lt.s32.totalorder %s30_s23, %s30_s23 }
  0x11   :  { %p5149_p5 = scmp.ne.s32.totalorder %s30_s23, %s5148_s24  ;;  %p5154_p7 = scmp.lt.s32.totalorder %s5148_s24, %s5148_s24 }
  0x13   :  { %p5155_p8 = por %p5154_p7, %p5153_p6 }
  0x15   :  { %p5156_p9 = pnand %p5155_p8, %p5149_p5 }
  0x17   :  { %5159 = shalt.err (!%p5156_p9)
}
  0x18   :  { %35 = dma.hbm_to_vmem [thread:$0]  %s6872_s1, 6144, %s30_s23, [#allocation7], %s5187_s18, %s5187_s18, %s5188_s19  }
  0x19   :  { %5180 = dma.done.wait [#allocation4], 1024  }
  0x1a   :  { %5181 = vsyncadd [#allocation4], 4294966272 }
  0x1b   :  { %5182 = dma.done.wait [#allocation7], 6144  }
  0x1c   :  { %5183 = vsyncadd [#allocation7], 4294961152  ;;  %v77_v0 = vld [vmem:[#allocation6 + $0x78] sm:$0xff]  ;;  %v76_v1 = vld [vmem:[#allocation6 + $0x70] sm:$0xff]  ;;  %v5190_v58 = vmov 1983009808   ;;  %v1181_v60 = vlaneseq }
  0x1d   :  { %4840 = vmatprep.subr.mxu0 %v77_v0  ;;  %4884 = vmatprep.subr.mxu1 %v77_v0  ;;  %v75_v2 = vld [vmem:[#allocation6 + $0x68] sm:$0xff]  ;;  %v74_v3 = vld [vmem:[#allocation6 + $0x60] sm:$0xff]  ;;  %v73_v5 = vld [vmem:[#allocation6 + $0x58] sm:$0xff]  ;;  %v1179_v59 = vunpack.c.l.s4 %v5190_v58  ;;  %vm2685_vm0 = vcmask 1043456   ;;  %vm2672_vm1 = vcmask 228352  }
  0x1e   :  { %4841 = vmatpush3.msra.mxu0 %v77_v0  ;;  %4885 = vmatpush3.msra.mxu1 %v77_v0  ;;  %v5232_v4 = vld [vmem:[#allocation3] sm:$0xff]  ;;  %v72_v6 = vld [vmem:[#allocation6 + $0x50] sm:$0xff]  ;;  %v71_v7 = vld [vmem:[#allocation6 + $0x48] sm:$0xff]  ;;  %v5403_v0 = vshrl.u32 %v1181_v60, 7 }
  0x1f   :  { %4842 = vmatprep.subr.mxu0 %v76_v1  ;;  %4886 = vmatprep.subr.mxu1 %v76_v1  ;;  %v70_v8 = vld [vmem:[#allocation6 + $0x40] sm:$0xff]  ;;  %v69_v9 = vld [vmem:[#allocation6 + $0x38] sm:$0xff]  ;;  %v68_v10 = vld [vmem:[#allocation6 + $0x30] sm:$0xff]  ;;  %v1180_v63 = vunpack.c.0.s8 %v1179_v59 }
  0x20   :  { %4843 = vmatpush3.msra.mxu0 %v76_v1  ;;  %4887 = vmatpush3.msra.mxu1 %v76_v1  ;;  %v67_v11 = vld [vmem:[#allocation6 + $0x28] sm:$0xff]  ;;  %v66_v12 = vld [vmem:[#allocation6 + $0x20] sm:$0xff]  ;;  %v65_v13 = vld [vmem:[#allocation6 + $0x18] sm:$0xff] }
  0x21   :  { %4844 = vmatprep.subr.mxu0 %v75_v2  ;;  %4888 = vmatprep.subr.mxu1 %v75_v2  ;;  %v64_v14 = vld [vmem:[#allocation6 + $0x10] sm:$0xff]  ;;  %v63_v15 = vld [vmem:[#allocation6 + $0x8] sm:$0xff]  ;;  %v62_v16 = vld [vmem:[#allocation6] sm:$0xff] }
  0x22   :  { %4845 = vmatpush3.msra.mxu0 %v75_v2  ;;  %4872 = vmatprep.mubr.f32.mxu0 %v5232_v4  ;;  %v5235_v17 = vld [vmem:[#allocation3 + $0x8] sm:$0xff]  ;;  %v5237_v18 = vld [vmem:[#allocation6 + $0xf8] sm:$0xff]  ;;  %v5239_v19 = vld [vmem:[#allocation3 + $0x10] sm:$0xff] }
  0x23   :  { %4846 = vmatprep.subr.mxu0 %v74_v3  ;;  %4889 = vmatpush3.msra.mxu1 %v75_v2  ;;  %v5241_v20 = vld [vmem:[#allocation6 + $0xf0] sm:$0xff]  ;;  %v5247_v21 = vld [vmem:[#allocation3 + $0x18] sm:$0xff]  ;;  %v5249_v22 = vld [vmem:[#allocation6 + $0xe8] sm:$0xff] }
  0x24   :  { %4847 = vmatpush3.msra.mxu0 %v74_v3  ;;  %4890 = vmatprep.subr.mxu1 %v74_v3  ;;  %v5252_v23 = vld [vmem:[#allocation3 + $0x20] sm:$0xff]  ;;  %v5262_v25 = vld [vmem:[#allocation3 + $0x28] sm:$0xff]  ;;  %v5264_v26 = vld [vmem:[#allocation6 + $0xd8] sm:$0xff] }
  0x25   :  { %4848 = vmatprep.subr.mxu0 %v73_v5  ;;  %4891 = vmatpush3.msra.mxu1 %v74_v3  ;;  %v5255_v24 = vld [vmem:[#allocation6 + $0xe0] sm:$0xff]  ;;  %v5267_v27 = vld [vmem:[#allocation3 + $0x30] sm:$0xff]  ;;  %v5276_v29 = vld [vmem:[#allocation3 + $0x38] sm:$0xff] }
  0x26   :  { %4849 = vmatpush3.msra.mxu0 %v73_v5  ;;  %4892 = vmatprep.subr.mxu1 %v73_v5  ;;  %v5270_v28 = vld [vmem:[#allocation6 + $0xd0] sm:$0xff]  ;;  %v5278_v30 = vld [vmem:[#allocation6 + $0xc8] sm:$0xff]  ;;  %v5282_v31 = vld [vmem:[#allocation6 + $0xc0] sm:$0xff] }
  0x27   :  { %4850 = vmatprep.subr.mxu0 %v72_v6  ;;  %4893 = vmatpush3.msra.mxu1 %v73_v5  ;;  %v5287_v32 = vld [vmem:[#allocation6 + $0xb8] sm:$0xff]  ;;  %v5292_v33 = vld [vmem:[#allocation6 + $0xb0] sm:$0xff]  ;;  %v5296_v34 = vld [vmem:[#allocation6 + $0xa8] sm:$0xff] }
  0x28   :  { %4851 = vmatpush3.msra.mxu0 %v72_v6  ;;  %4894 = vmatprep.subr.mxu1 %v72_v6  ;;  %v5300_v35 = vld [vmem:[#allocation6 + $0xa0] sm:$0xff]  ;;  %v5304_v36 = vld [vmem:[#allocation6 + $0x98] sm:$0xff]  ;;  %v5308_v37 = vld [vmem:[#allocation6 + $0x90] sm:$0xff] }
  0x29   :  { %4852 = vmatprep.subr.mxu0 %v71_v7  ;;  %4895 = vmatpush3.msra.mxu1 %v72_v6  ;;  %v5312_v38 = vld [vmem:[#allocation6 + $0x88] sm:$0xff]  ;;  %v5316_v39 = vld [vmem:[#allocation6 + $0x80] sm:$0xff]  ;;  %v5320_v40 = vld [vmem:[#allocation6 + $0x178] sm:$0xff] }
  0x2a   :  { %4853 = vmatpush3.msra.mxu0 %v71_v7  ;;  %4896 = vmatprep.subr.mxu1 %v71_v7  ;;  %v5324_v41 = vld [vmem:[#allocation6 + $0x170] sm:$0xff]  ;;  %v5330_v42 = vld [vmem:[#allocation6 + $0x168] sm:$0xff]  ;;  %v5334_v43 = vld [vmem:[#allocation6 + $0x160] sm:$0xff] }
  0x2b   :  { %4854 = vmatprep.subr.mxu0 %v70_v8  ;;  %4897 = vmatpush3.msra.mxu1 %v71_v7  ;;  %v5340_v44 = vld [vmem:[#allocation6 + $0x158] sm:$0xff]  ;;  %v5344_v45 = vld [vmem:[#allocation6 + $0x150] sm:$0xff]  ;;  %v5350_v46 = vld [vmem:[#allocation6 + $0x148] sm:$0xff] }
  0x2c   :  { %4855 = vmatpush3.msra.mxu0 %v70_v8  ;;  %4898 = vmatprep.subr.mxu1 %v70_v8  ;;  %v5354_v47 = vld [vmem:[#allocation6 + $0x140] sm:$0xff]  ;;  %v5359_v48 = vld [vmem:[#allocation6 + $0x138] sm:$0xff]  ;;  %v5364_v49 = vld [vmem:[#allocation6 + $0x130] sm:$0xff] }
  0x2d   :  { %4856 = vmatprep.subr.mxu0 %v69_v9  ;;  %4899 = vmatpush3.msra.mxu1 %v70_v8  ;;  %v5368_v50 = vld [vmem:[#allocation6 + $0x128] sm:$0xff]  ;;  %v5372_v51 = vld [vmem:[#allocation6 + $0x120] sm:$0xff]  ;;  %v5376_v52 = vld [vmem:[#allocation6 + $0x118] sm:$0xff] }
  0x2e   :  { %4857 = vmatpush3.msra.mxu0 %v69_v9  ;;  %4900 = vmatprep.subr.mxu1 %v69_v9  ;;  %v5380_v53 = vld [vmem:[#allocation6 + $0x110] sm:$0xff]  ;;  %v5384_v54 = vld [vmem:[#allocation6 + $0x108] sm:$0xff]  ;;  %v5388_v55 = vld [vmem:[#allocation6 + $0x100] sm:$0xff] }
  0x2f   :  { %4858 = vmatprep.subr.mxu0 %v68_v10  ;;  %4901 = vmatpush3.msra.mxu1 %v69_v9 }
  0x30   :  { %4859 = vmatpush3.msra.mxu0 %v68_v10  ;;  %4902 = vmatprep.subr.mxu1 %v68_v10 }
  0x31   :  { %4860 = vmatprep.subr.mxu0 %v67_v11  ;;  %4903 = vmatpush3.msra.mxu1 %v68_v10 }
  0x32   :  { %4861 = vmatpush3.msra.mxu0 %v67_v11  ;;  %4904 = vmatprep.subr.mxu1 %v67_v11 }
  0x33   :  { %4862 = vmatprep.subr.mxu0 %v66_v12  ;;  %4905 = vmatpush3.msra.mxu1 %v67_v11 }
  0x34   :  { %4863 = vmatpush3.msra.mxu0 %v66_v12  ;;  %4906 = vmatprep.subr.mxu1 %v66_v12 }
  0x35   :  { %4864 = vmatprep.subr.mxu0 %v65_v13  ;;  %4907 = vmatpush3.msra.mxu1 %v66_v12 }
  0x36   :  { %4865 = vmatpush3.msra.mxu0 %v65_v13  ;;  %4908 = vmatprep.subr.mxu1 %v65_v13 }
  0x37   :  { %4866 = vmatprep.subr.mxu0 %v64_v14  ;;  %4909 = vmatpush3.msra.mxu1 %v65_v13 }
  0x38   :  { %4867 = vmatpush3.msra.mxu0 %v64_v14  ;;  %4910 = vmatprep.subr.mxu1 %v64_v14 }
  0x39   :  { %4868 = vmatprep.subr.mxu0 %v63_v15  ;;  %4911 = vmatpush3.msra.mxu1 %v64_v14 }
  0x3a   :  { %4869 = vmatpush3.msra.mxu0 %v63_v15  ;;  %4912 = vmatprep.subr.mxu1 %v63_v15 }
  0x3b   :  { %4870 = vmatprep.subr.mxu0 %v62_v16  ;;  %4913 = vmatpush3.msra.mxu1 %v63_v15 }
  0x3c   :  { %4871 = vmatpush3.msra.mxu0 %v62_v16  ;;  %4914 = vmatprep.subr.mxu1 %v62_v16 }
  0x3d   :  { %4873 = vmatmul.mubr.f32.vlgmr.msra.gmra.mxu0 %v5235_v17  ;;  %4928 = vmatprep.subr.mxu0 %v5237_v18 }
  0x3e   :  { %4929 = vmatpush3.msra.mxu0 %v5237_v18  ;;  %4875 = vmatprep.mubr.f32.mxu0 %v5239_v19 }
  0x3f   :  { %4930 = vmatprep.subr.mxu0 %v5241_v20  ;;  %4915 = vmatpush3.msra.mxu1 %v62_v16 }
  0x40   :  { %4931 = vmatpush3.msra.mxu0 %v5241_v20  ;;  %4972 = vmatprep.subr.mxu1 %v5237_v18 }
  0x41   :  { %4876 = vmatmul.mubr.f32.gmra.mxu0 %v5247_v21  ;;  %4932 = vmatprep.subr.mxu0 %v5249_v22 }
  0x42   :  { %4933 = vmatpush3.msra.mxu0 %v5249_v22  ;;  %4878 = vmatprep.mubr.f32.mxu0 %v5252_v23 }
  0x43   :  { %4934 = vmatprep.subr.mxu0 %v5255_v24 }
  0x44   :  { %4935 = vmatpush3.msra.mxu0 %v5255_v24 }
  0x45   :  { %4879 = vmatmul.mubr.f32.gmra.mxu0 %v5262_v25  ;;  %4936 = vmatprep.subr.mxu0 %v5264_v26 }
  0x46   :  { %4937 = vmatpush3.msra.mxu0 %v5264_v26  ;;  %4881 = vmatprep.mubr.f32.mxu0 %v5267_v27 }
  0x47   :  { %4938 = vmatprep.subr.mxu0 %v5270_v28 }
  0x48   :  { %4939 = vmatpush3.msra.mxu0 %v5270_v28 }
  0x49   :  { %4882 = vmatmul.mubr.f32.gmra.mxu0 %v5276_v29  ;;  %4940 = vmatprep.subr.mxu0 %v5278_v30 }
  0x4a   :  { %4941 = vmatpush3.msra.mxu0 %v5278_v30  ;;  %4960 = vmatprep.mubr.f32.mxu0 %v5232_v4 }
  0x4b   :  { %4942 = vmatprep.subr.mxu0 %v5282_v31 }
  0x4c   :  { %4943 = vmatpush3.msra.mxu0 %v5282_v31 }
  0x4d   :  { %4944 = vmatprep.subr.mxu0 %v5287_v32 }
  0x4e   :  { %4945 = vmatpush3.msra.mxu0 %v5287_v32 }
  0x4f   :  { %4946 = vmatprep.subr.mxu0 %v5292_v33 }
  0x50   :  { %4947 = vmatpush3.msra.mxu0 %v5292_v33 }
  0x51   :  { %4948 = vmatprep.subr.mxu0 %v5296_v34 }
  0x52   :  { %4949 = vmatpush3.msra.mxu0 %v5296_v34 }
  0x53   :  { %4950 = vmatprep.subr.mxu0 %v5300_v35 }
  0x54   :  { %4951 = vmatpush3.msra.mxu0 %v5300_v35 }
  0x55   :  { %4952 = vmatprep.subr.mxu0 %v5304_v36 }
  0x56   :  { %4953 = vmatpush3.msra.mxu0 %v5304_v36 }
  0x57   :  { %4954 = vmatprep.subr.mxu0 %v5308_v37 }
  0x58   :  { %4955 = vmatpush3.msra.mxu0 %v5308_v37 }
  0x59   :  { %4956 = vmatprep.subr.mxu0 %v5312_v38 }
  0x5a   :  { %4957 = vmatpush3.msra.mxu0 %v5312_v38 }
  0x5b   :  { %4958 = vmatprep.subr.mxu0 %v5316_v39 }
  0x5c   :  { %4959 = vmatpush3.msra.mxu0 %v5316_v39 }
  0x5d   :  { %4961 = vmatmul.mubr.f32.vlgmr.msra.gmra.mxu0 %v5235_v17  ;;  %5016 = vmatprep.subr.mxu0 %v5320_v40 }
  0x5e   :  { %5017 = vmatpush3.msra.mxu0 %v5320_v40  ;;  %4963 = vmatprep.mubr.f32.mxu0 %v5239_v19 }
  0x5f   :  { %5018 = vmatprep.subr.mxu0 %v5324_v41 }
  0x60   :  { %5019 = vmatpush3.msra.mxu0 %v5324_v41 }
  0x61   :  { %4964 = vmatmul.mubr.f32.gmra.mxu0 %v5247_v21  ;;  %5020 = vmatprep.subr.mxu0 %v5330_v42 }
  0x62   :  { %5021 = vmatpush3.msra.mxu0 %v5330_v42  ;;  %4966 = vmatprep.mubr.f32.mxu0 %v5252_v23 }
  0x63   :  { %5022 = vmatprep.subr.mxu0 %v5334_v43 }
  0x64   :  { %5023 = vmatpush3.msra.mxu0 %v5334_v43 }
  0x65   :  { %4967 = vmatmul.mubr.f32.gmra.mxu0 %v5262_v25  ;;  %5024 = vmatprep.subr.mxu0 %v5340_v44 }
  0x66   :  { %5025 = vmatpush3.msra.mxu0 %v5340_v44  ;;  %4969 = vmatprep.mubr.f32.mxu0 %v5267_v27 }
  0x67   :  { %5026 = vmatprep.subr.mxu0 %v5344_v45 }
  0x68   :  { %5027 = vmatpush3.msra.mxu0 %v5344_v45 }
  0x69   :  { %4970 = vmatmul.mubr.f32.gmra.mxu0 %v5276_v29  ;;  %5028 = vmatprep.subr.mxu0 %v5350_v46 }
  0x6a   :  { %5029 = vmatpush3.msra.mxu0 %v5350_v46  ;;  %5048 = vmatprep.mubr.f32.mxu0 %v5232_v4  ;;  %v5409_v4 = vsub.s32 %v1180_v63, %v5403_v0 }
  0x6b   :  { %5030 = vmatprep.subr.mxu0 %v5354_v47 }
  0x6c   :  { %5031 = vmatpush3.msra.mxu0 %v5354_v47 }
  0x6d   :  { %5032 = vmatprep.subr.mxu0 %v5359_v48 }
  0x6e   :  { %5033 = vmatpush3.msra.mxu0 %v5359_v48 }
  0x6f   :  { %5034 = vmatprep.subr.mxu0 %v5364_v49 }
  0x70   :  { %5035 = vmatpush3.msra.mxu0 %v5364_v49 }
  0x71   :  { %5036 = vmatprep.subr.mxu0 %v5368_v50 }
  0x72   :  { %5037 = vmatpush3.msra.mxu0 %v5368_v50 }
  0x73   :  { %5038 = vmatprep.subr.mxu0 %v5372_v51 }
  0x74   :  { %5039 = vmatpush3.msra.mxu0 %v5372_v51 }
  0x75   :  { %5040 = vmatprep.subr.mxu0 %v5376_v52 }
  0x76   :  { %5041 = vmatpush3.msra.mxu0 %v5376_v52 }
  0x77   :  { %5042 = vmatprep.subr.mxu0 %v5380_v53 }
  0x78   :  { %5043 = vmatpush3.msra.mxu0 %v5380_v53 }
  0x79   :  { %5044 = vmatprep.subr.mxu0 %v5384_v54 }
  0x7a   :  { %5045 = vmatpush3.msra.mxu0 %v5384_v54 }
  0x7b   :  { %5046 = vmatprep.subr.mxu0 %v5388_v55 }
  0x7c   :  { %5047 = vmatpush3.msra.mxu0 %v5388_v55 }
  0x7d   :  { %5049 = vmatmul.mubr.f32.vlgmr.msra.gmra.mxu0 %v5235_v17 }
  0x7e   :  { %5051 = vmatprep.mubr.f32.mxu0 %v5239_v19 }
  0x81   :  { %5052 = vmatmul.mubr.f32.gmra.mxu0 %v5247_v21  ;;  %v4631_v21 = vld [vmem:[%s6874_s3 + $0xf] ss:$0 sm:$0xff] }
  0x82   :  { %5054 = vmatprep.mubr.f32.mxu0 %v5252_v23 }
  0x85   :  { %5055 = vmatmul.mubr.f32.gmra.mxu0 %v5262_v25 }
  0x86   :  { %5057 = vmatprep.mubr.f32.mxu0 %v5267_v27 }
  0x89   :  { %5058 = vmatmul.mubr.f32.gmra.mxu0 %v5276_v29 }
  0xfd   :  { %v4874_v56 = vpop.f32.mrf.mxu0 }
  0xff   :  { %v144_v57 = vpop.f32.mrf.mxu0 }
 0x100   :  { %4916 = vmatprep.mubr.f32.mxu1 %v144_v57 }
 0x101   :  { %v4877_v61 = vpop.f32.mrf.mxu0  ;;  %4917 = vmatmul.mubr.f32.vlgmr.msra.gmra.mxu1 %v4874_v56 }
 0x102   :  { %4973 = vmatpush3.msra.mxu1 %v5237_v18 }
 0x103   :  { %v154_v62 = vpop.f32.mrf.mxu0  ;;  %4974 = vmatprep.subr.mxu1 %v5241_v20 }
 0x104   :  { %4919 = vmatprep.mubr.f32.mxu1 %v154_v62  ;;  %4975 = vmatpush3.msra.mxu1 %v5241_v20  ;;  %v4630_v20 = vld [vmem:[%s6874_s3 + $0xe] ss:$0 sm:$0xff] }
 0x105   :  { %v4880_v1 = vpop.f32.mrf.mxu0  ;;  %4920 = vmatmul.mubr.f32.gmra.mxu1 %v4877_v61  ;;  %4976 = vmatprep.subr.mxu1 %v5249_v22 }
 0x106   :  { %v1684_v2 = vcombine.low %v4874_v56, %v4880_v1  ;;  %v1685_v3 = vcombine.high %v4874_v56, %v4880_v1  ;;  %4977 = vmatpush3.msra.mxu1 %v5249_v22 }
 0x107   :  { %v164_v5 = vpop.f32.mrf.mxu0  ;;  %4978 = vmatprep.subr.mxu1 %v5255_v24 }
 0x108   :  { %v1208_v6 = vcombine.low %v144_v57, %v164_v5  ;;  %v1209_v7 = vcombine.high %v144_v57, %v164_v5  ;;  %4922 = vmatprep.mubr.f32.mxu1 %v164_v5  ;;  %4979 = vmatpush3.msra.mxu1 %v5255_v24  ;;  %v5414_v11 = vrot.slane %v1684_v2, %v5409_v4 }
 0x109   :  { %v4883_v8 = vpop.f32.mrf.mxu0  ;;  %4923 = vmatmul.mubr.f32.gmra.mxu1 %v4880_v1  ;;  %v5417_v12 = vrot.slane %v1685_v3, %v5409_v4  ;;  %4980 = vmatprep.subr.mxu1 %v5264_v26 }
 0x10a   :  { %v1700_v9 = vcombine.low %v4877_v61, %v4883_v8  ;;  %v1701_v10 = vcombine.high %v4877_v61, %v4883_v8  ;;  %4981 = vmatpush3.msra.mxu1 %v5264_v26  ;;  %v5428_v18 = vrot.slane %v1208_v6, %v5409_v4  ;;  %v5441_v25 = vrot.slane %v1209_v7, %v5409_v4 }
 0x10b   :  { %6908 = vst [vmem:[#allocation12_spill] sm:$0xff] %v5417_v12  ;;  %v174_v13 = vpop.f32.mrf.mxu0  ;;  %4982 = vmatprep.subr.mxu1 %v5270_v28 }
 0x10c   :  { %v5421_v14 = vrot.slane %v1700_v9, %v5409_v4  ;;  %v5424_v15 = vrot.slane %v1701_v10, %v5409_v4  ;;  %v1224_v16 = vcombine.low %v154_v62, %v174_v13  ;;  %v1225_v17 = vcombine.high %v154_v62, %v174_v13  ;;  %4925 = vmatprep.mubr.f32.mxu1 %v174_v13 }
 0x10d   :  { %4983 = vmatpush3.msra.mxu1 %v5270_v28 }
 0x10e   :  { %6909 = vst [vmem:[#allocation13_spill] sm:$0xff] %v5424_v15  ;;  %v5444_v26 = vrot.slane %v1224_v16, %v5409_v4  ;;  %v5447_v29 = vrot.slane %v1225_v17, %v5409_v4  ;;  %4926 = vmatmul.mubr.f32.gmra.mxu1 %v4883_v8  ;;  %4984 = vmatprep.subr.mxu1 %v5278_v30 }
 0x10f   :  { %4985 = vmatpush3.msra.mxu1 %v5278_v30 }
 0x110   :  { %4986 = vmatprep.subr.mxu1 %v5282_v31 }
 0x111   :  { %4987 = vmatpush3.msra.mxu1 %v5282_v31 }
 0x112   :  { %4988 = vmatprep.subr.mxu1 %v5287_v32 }
 0x113   :  { %4989 = vmatpush3.msra.mxu1 %v5287_v32 }
 0x114   :  { %4990 = vmatprep.subr.mxu1 %v5292_v33 }
 0x115   :  { %4991 = vmatpush3.msra.mxu1 %v5292_v33 }
 0x116   :  { %4992 = vmatprep.subr.mxu1 %v5296_v34 }
 0x117   :  { %4993 = vmatpush3.msra.mxu1 %v5296_v34 }
 0x118   :  { %4994 = vmatprep.subr.mxu1 %v5300_v35 }
 0x119   :  { %4995 = vmatpush3.msra.mxu1 %v5300_v35 }
 0x11a   :  { %4996 = vmatprep.subr.mxu1 %v5304_v36 }
 0x11b   :  { %4997 = vmatpush3.msra.mxu1 %v5304_v36 }
 0x11c   :  { %4998 = vmatprep.subr.mxu1 %v5308_v37 }
 0x11d   :  { %v4962_v30 = vpop.f32.mrf.mxu0  ;;  %4999 = vmatpush3.msra.mxu1 %v5308_v37 }
 0x11e   :  { %5000 = vmatprep.subr.mxu1 %v5312_v38 }
 0x11f   :  { %v389_v31 = vpop.f32.mrf.mxu0  ;;  %5001 = vmatpush3.msra.mxu1 %v5312_v38 }
 0x120   :  { %5004 = vmatprep.mubr.f32.mxu1 %v389_v31  ;;  %5002 = vmatprep.subr.mxu1 %v5316_v39 }
 0x121   :  { %v4965_v32 = vpop.f32.mrf.mxu0  ;;  %5003 = vmatpush3.msra.mxu1 %v5316_v39 }
 0x122   :  { %5005 = vmatmul.mubr.f32.vlgmr.msra.gmra.mxu1 %v4962_v30  ;;  %5060 = vmatprep.subr.mxu1 %v5320_v40 }
 0x123   :  { %v399_v33 = vpop.f32.mrf.mxu0  ;;  %5061 = vmatpush3.msra.mxu1 %v5320_v40 }
 0x124   :  { %5007 = vmatprep.mubr.f32.mxu1 %v399_v33  ;;  %5062 = vmatprep.subr.mxu1 %v5324_v41 }
 0x125   :  { %v4968_v34 = vpop.f32.mrf.mxu0  ;;  %5063 = vmatpush3.msra.mxu1 %v5324_v41 }
 0x126   :  { %v1820_v35 = vcombine.low %v4962_v30, %v4968_v34  ;;  %v1821_v36 = vcombine.high %v4962_v30, %v4968_v34  ;;  %5008 = vmatmul.mubr.f32.gmra.mxu1 %v4965_v32  ;;  %5064 = vmatprep.subr.mxu1 %v5330_v42 }
 0x127   :  { %v409_v37 = vpop.f32.mrf.mxu0  ;;  %5065 = vmatpush3.msra.mxu1 %v5330_v42 }
 0x128   :  { %v1344_v38 = vcombine.low %v389_v31, %v409_v37  ;;  %v1345_v39 = vcombine.high %v389_v31, %v409_v37  ;;  %5066 = vmatprep.subr.mxu1 %v5334_v43  ;;  %5010 = vmatprep.mubr.f32.mxu1 %v409_v37  ;;  %v5486_v41 = vrot.slane %v1820_v35, %v5409_v4 }
 0x129   :  { %v4971_v40 = vpop.f32.mrf.mxu0  ;;  %5067 = vmatpush3.msra.mxu1 %v5334_v43  ;;  %v5489_v61 = vrot.slane %v1821_v36, %v5409_v4 }
 0x12a   :  { %v1836_v59 = vcombine.low %v4965_v32, %v4971_v40  ;;  %v1837_v60 = vcombine.high %v4965_v32, %v4971_v40  ;;  %5011 = vmatmul.mubr.f32.gmra.mxu1 %v4968_v34  ;;  %5068 = vmatprep.subr.mxu1 %v5340_v44  ;;  %v5500_v2 = vrot.slane %v1344_v38, %v5409_v4 }
 0x12b   :  { %v419_v42 = vpop.f32.mrf.mxu0  ;;  %5069 = vmatpush3.msra.mxu1 %v5340_v44  ;;  %v5513_v7 = vrot.slane %v1345_v39, %v5409_v4 }
 0x12c   :  { %v5493_v62 = vrot.slane %v1836_v59, %v5409_v4  ;;  %v5496_v63 = vrot.slane %v1837_v60, %v5409_v4  ;;  %v1360_v43 = vcombine.low %v399_v33, %v419_v42  ;;  %v1361_v1 = vcombine.high %v399_v33, %v419_v42  ;;  %5070 = vmatprep.subr.mxu1 %v5344_v45 }
 0x12d   :  { %5013 = vmatprep.mubr.f32.mxu1 %v419_v42  ;;  %5071 = vmatpush3.msra.mxu1 %v5344_v45 }
 0x12e   :  { %v1884_v3 = vcombine.low %v5486_v41, %v5493_v62  ;;  %v1885_v5 = vcombine.high %v5486_v41, %v5493_v62  ;;  %v1900_v6 = vcombine.low %v5489_v61, %v5496_v63  ;;  %v1901_v44 = vcombine.high %v5489_v61, %v5496_v63  ;;  %5014 = vmatmul.mubr.f32.gmra.mxu1 %v4971_v40  ;;  %v4636_v61 = vld [vmem:[%s6874_s3 + $0x14] ss:$0 sm:$0xff] }
 0x12f   :  { %v5516_v8 = vrot.slane %v1360_v43, %v5409_v4  ;;  %v5519_v9 = vrot.slane %v1361_v1, %v5409_v4  ;;  %5072 = vmatprep.subr.mxu1 %v5350_v46 }
 0x130   :  { %5073 = vmatpush3.msra.mxu1 %v5350_v46 }
 0x131   :  { %5074 = vmatprep.subr.mxu1 %v5354_v47 }
 0x132   :  { %5075 = vmatpush3.msra.mxu1 %v5354_v47 }
 0x133   :  { %5076 = vmatprep.subr.mxu1 %v5359_v48 }
 0x134   :  { %5077 = vmatpush3.msra.mxu1 %v5359_v48 }
 0x135   :  { %5078 = vmatprep.subr.mxu1 %v5364_v49 }
 0x136   :  { %5079 = vmatpush3.msra.mxu1 %v5364_v49 }
 0x137   :  { %5080 = vmatprep.subr.mxu1 %v5368_v50 }
 0x138   :  { %5081 = vmatpush3.msra.mxu1 %v5368_v50 }
 0x139   :  { %5082 = vmatprep.subr.mxu1 %v5372_v51 }
 0x13a   :  { %5083 = vmatpush3.msra.mxu1 %v5372_v51 }
 0x13b   :  { %5084 = vmatprep.subr.mxu1 %v5376_v52 }
 0x13c   :  { %5085 = vmatpush3.msra.mxu1 %v5376_v52 }
 0x13d   :  { %5086 = vmatprep.subr.mxu1 %v5380_v53  ;;  %v5050_v46 = vpop.f32.mrf.mxu0 }
 0x13e   :  { %5087 = vmatpush3.msra.mxu1 %v5380_v53 }
 0x13f   :  { %5088 = vmatprep.subr.mxu1 %v5384_v54  ;;  %v634_v47 = vpop.f32.mrf.mxu0 }
 0x140   :  { %5089 = vmatpush3.msra.mxu1 %v5384_v54  ;;  %5092 = vmatprep.mubr.f32.mxu1 %v634_v47 }
 0x141   :  { %5090 = vmatprep.subr.mxu1 %v5388_v55  ;;  %v5053_v48 = vpop.f32.mrf.mxu0 }
 0x142   :  { %5091 = vmatpush3.msra.mxu1 %v5388_v55 }
 0x143   :  { %5093 = vmatmul.mubr.f32.vlgmr.msra.gmra.mxu1 %v5050_v46  ;;  %v644_v49 = vpop.f32.mrf.mxu0 }
 0x144   :  { %5095 = vmatprep.mubr.f32.mxu1 %v644_v49 }
 0x145   :  { %v5056_v50 = vpop.f32.mrf.mxu0 }
 0x146   :  { %v1956_v51 = vcombine.low %v5050_v46, %v5056_v50  ;;  %v1957_v52 = vcombine.high %v5050_v46, %v5056_v50 }
 0x147   :  { %5096 = vmatmul.mubr.f32.gmra.mxu1 %v5053_v48  ;;  %v654_v17 = vpop.f32.mrf.mxu0 }
 0x148   :  { %v1480_v53 = vcombine.low %v634_v47, %v654_v17  ;;  %v1481_v30 = vcombine.high %v634_v47, %v654_v17  ;;  %5098 = vmatprep.mubr.f32.mxu1 %v654_v17  ;;  %v5550_v33 = vrot.slane %v1956_v51, %v5409_v4  ;;  %v5553_v34 = vrot.slane %v1957_v52, %v5409_v4  ;;  %v4618_v17 = vld [vmem:[%s6874_s3 + $0x2] ss:$0 sm:$0xff] }
 0x149   :  { %v5059_v31 = vpop.f32.mrf.mxu0  ;;  %v6876_v51 = vmov 0.0   ;;  %v5192_v52 = vmov 0  }
 0x14a   :  { %v1972_v32 = vcombine.low %v5053_v48, %v5059_v31  ;;  %v1973_v54 = vcombine.high %v5053_v48, %v5059_v31  ;;  %v5570_v42 = vrot.slane %v1480_v53, %v5409_v4  ;;  %v5573_v43 = vrot.slane %v1481_v30, %v5409_v4  ;;  %2798 = vmatprep.mubr.f32.mxu0 %v6876_v51  ;;  %v4616_v53 = vld [vmem:[%s6874_s3] ss:$0 sm:$0xff]  ;;  %v4619_v30 = vld [vmem:[%s6874_s3 + $0x3] ss:$0 sm:$0xff] }
 0x14b   :  { %5099 = vmatmul.mubr.f32.gmra.mxu1 %v5056_v50  ;;  %v664_v55 = vpop.f32.mrf.mxu0  ;;  %5114 = vset.pattern.permute.xlu1 %v5192_v52 }
 0x14c   :  { %v5556_v35 = vrot.slane %v1972_v32, %v5409_v4  ;;  %v5559_v36 = vrot.slane %v1973_v54, %v5409_v4  ;;  %v1496_v37 = vcombine.low %v644_v49, %v664_v55  ;;  %v1497_v38 = vcombine.high %v644_v49, %v664_v55  ;;  %5101 = vmatprep.mubr.f32.mxu1 %v664_v55  ;;  %v4621_v32 = vld [vmem:[%s6874_s3 + $0x5] ss:$0 sm:$0xff]  ;;  %v4620_v54 = vld [vmem:[%s6874_s3 + $0x4] ss:$0 sm:$0xff]  ;;  %v4623_v55 = vld [vmem:[%s6874_s3 + $0x7] ss:$0 sm:$0xff] }
 0x14d   :  { %5113 = vset.pattern.permute.xlu0 %v5192_v52  ;;  %1057 = vperm.xlu1 %5114, %v4618_v17   ;;  %v4624_v52 = vld [vmem:[%s6874_s3 + $0x8] ss:$0 sm:$0xff] }
 0x14e   :  { %v2036_v59 = vcombine.low %v5553_v34, %v5559_v36  ;;  %v2037_v60 = vcombine.high %v5553_v34, %v5559_v36  ;;  %v5576_v1 = vrot.slane %v1496_v37, %v5409_v4  ;;  %v5579_v46 = vrot.slane %v1497_v38, %v5409_v4  ;;  %1049 = vperm.xlu0 %5113, %v4616_v53   ;;  %v4622_v37 = vld [vmem:[%s6874_s3 + $0x6] ss:$0 sm:$0xff]  ;;  %v4625_v38 = vld [vmem:[%s6874_s3 + $0x9] ss:$0 sm:$0xff]  ;;  %v4627_v53 = vld [vmem:[%s6874_s3 + $0xb] ss:$0 sm:$0xff] }
 0x14f   :  { %5102 = vmatmul.mubr.f32.gmra.mxu1 %v5059_v31  ;;  %v4617_v31 = vld [vmem:[%s6874_s3 + $0x1] ss:$0 sm:$0xff]  ;;  %v1192_v34 = vcombine.low %v5239_v19, %v5267_v27 }
 0x150   :  { %2887 = vmatprep.mubr.f32.mxu1 %v6876_v51 }
 0x151   :  { %1061 = vperm.xlu1 %5114, %v4619_v30   ;;  %v4626_v30 = vld [vmem:[%s6874_s3 + $0xa] ss:$0 sm:$0xff] }
 0x152   :  { %1053 = vperm.xlu0 %5113, %v4617_v31  }
 0x155   :  { %1069 = vperm.xlu1 %5114, %v4621_v32  }
 0x156   :  { %1065 = vperm.xlu0 %5113, %v4620_v54   ;;  %v4629_v54 = vld [vmem:[%s6874_s3 + $0xd] ss:$0 sm:$0xff] }
 0x159   :  { %1077 = vperm.xlu1 %5114, %v4623_v55   ;;  %v4628_v55 = vld [vmem:[%s6874_s3 + $0xc] ss:$0 sm:$0xff] }
 0x15a   :  { %1073 = vperm.xlu0 %5113, %v4622_v37  }
 0x15d   :  { %1085 = vperm.xlu1 %5114, %v4625_v38  }
 0x15e   :  { %1081 = vperm.xlu0 %5113, %v4624_v52  }
 0x161   :  { %1093 = vperm.xlu1 %5114, %v4627_v53   ;;  %v5193_v53 = vmov 1934713408  }
 0x162   :  { %1089 = vperm.xlu0 %5113, %v4626_v30   ;;  %v1243_v30 = vunpack.c.l.s4 %v5193_v53 }
 0x165   :  { %1101 = vperm.xlu1 %5114, %v4629_v54   ;;  %v1244_v54 = vunpack.c.0.s8 %v1243_v30 }
 0x166   :  { %1097 = vperm.xlu0 %5113, %v4628_v55  }
 0x169   :  { %1109 = vperm.xlu1 %5114, %v4631_v21  }
 0x16a   :  { %1105 = vperm.xlu0 %5113, %v4630_v20  }
 0x1c1   :  { %v4918_v17 = vpop.f32.mrf.mxu1 }
 0x1c3   :  { %v5627_v31 = vpop.f32.mrf.mxu1 }
 0x1c5   :  { %v4921_v32 = vpop.f32.mrf.mxu1 }
 0x1c7   :  { %v5635_v37 = vpop.f32.mrf.mxu1 }
 0x1c9   :  { %v4924_v38 = vpop.f32.mrf.mxu1 }
 0x1ca   :  { %v1788_v52 = vcombine.low %v4918_v17, %v4924_v38  ;;  %v1789_v24 = vcombine.high %v4918_v17, %v4924_v38  ;;  %v4633_v17 = vld [vmem:[%s6874_s3 + $0x11] ss:$0 sm:$0xff]  ;;  %v4632_v38 = vld [vmem:[%s6874_s3 + $0x10] ss:$0 sm:$0xff] }
 0x1cb   :  { %v5637_v22 = vpop.f32.mrf.mxu1  ;;  %1117 = vperm.xlu1 %5114, %v4633_v17   ;;  %1113 = vperm.xlu0 %5113, %v4632_v38   ;;  %v4635_v17 = vld [vmem:[%s6874_s3 + $0x13] ss:$0 sm:$0xff] }
 0x1cc   :  { %v1796_v53 = vrot.slane %v1788_v52, %v5409_v4  ;;  %v1803_v16 = vrot.slane %v1789_v24, %v5409_v4  ;;  %v4634_v24 = vld [vmem:[%s6874_s3 + $0x12] ss:$0 sm:$0xff] }
 0x1ce   :  { %v4927_v40 = vpop.f32.mrf.mxu1 }
 0x1cf   :  { %v1804_v55 = vcombine.low %v4921_v32, %v4927_v40  ;;  %v1805_v39 = vcombine.high %v4921_v32, %v4927_v40  ;;  %v5656_v40 = vsub.s32 %v1244_v54, %v5403_v0  ;;  %1125 = vperm.xlu1 %5114, %v4635_v17   ;;  %1121 = vperm.xlu0 %5113, %v4634_v24  }
 0x1d0   :  { %v5734_v17 = vpop.f32.mrf.mxu1 }
 0x1d1   :  { %v1812_v21 = vrot.slane %v1804_v55, %v5409_v4  ;;  %v1819_v20 = vrot.slane %v1805_v39, %v5409_v4  ;;  %v5668_v39 = vrot.slane %v1884_v3, %v5656_v40  ;;  %v5674_v0 = vrot.slane %v1885_v5, %v5656_v40 }
 0x1d2   :  { %v5692_v41 = vrot.slane %v1900_v6, %v5656_v40  ;;  %v5698_v62 = vrot.slane %v1901_v44, %v5656_v40  ;;  %v4637_v6 = vld [vmem:[%s6874_s3 + $0x15] ss:$0 sm:$0xff]  ;;  %v4646_v44 = vld [vmem:[%s6874_s3 + $0x1e] ss:$0 sm:$0xff] }
 0x1d3   :  { %v1852_v32 = vcombine.low %v1796_v53, %v1812_v21  ;;  %v1853_v30 = vcombine.high %v1796_v53, %v1812_v21  ;;  %v1868_v13 = vcombine.low %v1803_v16, %v1819_v20  ;;  %v1869_v58 = vcombine.high %v1803_v16, %v1819_v20  ;;  %1133 = vperm.xlu1 %5114, %v4637_v6   ;;  %v4639_v21 = vld [vmem:[%s6874_s3 + $0x17] ss:$0 sm:$0xff]  ;;  %v4638_v20 = vld [vmem:[%s6874_s3 + $0x16] ss:$0 sm:$0xff]  ;;  %v4643_v6 = vld [vmem:[%s6874_s3 + $0x1b] ss:$0 sm:$0xff] }
 0x1d4   :  { %6912 = vst [vmem:[#allocation16_spill] sm:$0xff] %v5692_v41  ;;  %6913 = vst [vmem:[#allocation17_spill] sm:$0xff] %v5698_v62  ;;  %1129 = vperm.xlu0 %5113, %v4636_v61   ;;  %v4642_v61 = vld [vmem:[%s6874_s3 + $0x1a] ss:$0 sm:$0xff] }
 0x1d5   :  { %v5677_v16 = vrot.slane %v1852_v32, %v5656_v40  ;;  %v5680_v52 = vrot.slane %v1853_v30, %v5656_v40  ;;  %v5683_v54 = vrot.slane %v1868_v13, %v5656_v40  ;;  %v5686_v55 = vrot.slane %v1869_v58, %v5656_v40  ;;  %v4641_v32 = vld [vmem:[%s6874_s3 + $0x19] ss:$0 sm:$0xff]  ;;  %v4640_v30 = vld [vmem:[%s6874_s3 + $0x18] ss:$0 sm:$0xff] }
 0x1d7   :  { %6910 = vst [vmem:[#allocation14_spill] sm:$0xff] %v5683_v54  ;;  %6911 = vst [vmem:[#allocation15_spill] sm:$0xff] %v5686_v55  ;;  %1141 = vperm.xlu1 %5114, %v4639_v21  }
 0x1d8   :  { %1137 = vperm.xlu0 %5113, %v4638_v20  }
 0x1db   :  { %1149 = vperm.xlu1 %5114, %v4641_v32   ;;  %v4645_v32 = vld [vmem:[%s6874_s3 + $0x1d] ss:$0 sm:$0xff] }
 0x1dc   :  { %1145 = vperm.xlu0 %5113, %v4640_v30   ;;  %v4644_v30 = vld [vmem:[%s6874_s3 + $0x1c] ss:$0 sm:$0xff] }
 0x1df   :  { %1157 = vperm.xlu1 %5114, %v4643_v6  }
 0x1e0   :  { %1153 = vperm.xlu0 %5113, %v4642_v61   ;;  %v4647_v61 = vld [vmem:[%s6874_s3 + $0x1f] ss:$0 sm:$0xff] }
 0x1e2   :  { %v5736_v24 = vpop.f32.mrf.mxu1 }
 0x1e3   :  { %1165 = vperm.xlu1 %5114, %v4645_v32  }
 0x1e4   :  { %v5744_v21 = vpop.f32.mrf.mxu1  ;;  %1161 = vperm.xlu0 %5113, %v4644_v30  }
 0x1e6   :  { %v5746_v20 = vpop.f32.mrf.mxu1 }
 0x1e7   :  { %1173 = vperm.xlu1 %5114, %v4647_v61  }
 0x1e8   :  { %v5754_v53 = vpop.f32.mrf.mxu1  ;;  %1169 = vperm.xlu0 %5113, %v4646_v44   ;;  %v5784_v44 = vrot.slane %v2036_v59, %v5656_v40 }
 0x1ea   :  { %v5756_v38 = vpop.f32.mrf.mxu1  ;;  %6916 = vst [vmem:[#allocation20_spill] sm:$0xff] %v5784_v44 }
 0x1eb   :  { %v1925_v6 = vcombine.high %v5736_v24, %v5756_v38 }
 0x1ec   :  { %v5766_v63 = vpop.f32.mrf.mxu1 }
 0x1ed   :  { %v1939_v30 = vrot.slane %v1925_v6, %v5409_v4  ;;  %v5790_v6 = vrot.slane %v2037_v60, %v5656_v40 }
 0x1ee   :  { %v5768_v13 = vpop.f32.mrf.mxu1 }
 0x1ef   :  { %v1941_v32 = vcombine.high %v5746_v20, %v5768_v13  ;;  %6917 = vst [vmem:[#allocation21_spill] sm:$0xff] %v5790_v6 }
 0x1f0   :  { %v533_v59 = vpop.f32.mrf.mxu1 }
 0x1f1   :  { %v1955_v5 = vrot.slane %v1941_v32, %v5409_v4  ;;  %v5115_v32 = vld [vmem:[#allocation3] sm:$0xff] }
 0x1f2   :  { %v1177_v49 = vcombine.high %v5115_v32, %v5252_v23 }
 0x1f3   :  { %v2004_v58 = vcombine.low %v1939_v30, %v1955_v5  ;;  %v2005_v3 = vcombine.high %v1939_v30, %v1955_v5  ;;  %v1176_v30 = vcombine.low %v5115_v32, %v5252_v23 }
 0x1f4   :  { %v1191_v45 = vrot.slane %v1177_v49, %v5409_v4  ;;  %v1448_v49 = vcombine.low %v5744_v21, %v5766_v63 }
 0x1f5   :  { %v5775_v57 = vrot.slane %v2004_v58, %v5656_v40  ;;  %v5778_v50 = vrot.slane %v2005_v3, %v5656_v40  ;;  %v1184_v5 = vrot.slane %v1176_v30, %v5409_v4  ;;  %v1200_v58 = vrot.slane %v1192_v34, %v5409_v4 }
 0x1f6   :  { %v1193_v3 = vcombine.high %v5239_v19, %v5267_v27  ;;  %v1328_v30 = vcombine.low %v5635_v37, %v5734_v17  ;;  %v1464_v34 = vcombine.low %v5754_v53, %v533_v59  ;;  %v1312_v19 = vcombine.low %v5627_v31, %v5637_v22 }
 0x1f7   :  { %6914 = vst [vmem:[#allocation18_spill] sm:$0xff] %v5775_v57  ;;  %6915 = vst [vmem:[#allocation19_spill] sm:$0xff] %v5778_v50  ;;  %v1240_v48 = vcombine.low %v1184_v5, %v1200_v58  ;;  %v1241_v28 = vcombine.high %v1184_v5, %v1200_v58  ;;  %v6918_v5 = vcombine.low %v5428_v18, %v5444_v26 }
 0x1f8   :  { %v1207_v47 = vrot.slane %v1193_v3, %v5409_v4  ;;  %v1320_v15 = vrot.slane %v1312_v19, %v5409_v4  ;;  %v1456_v6 = vrot.slane %v1448_v49, %v5409_v4  ;;  %v1465_v19 = vcombine.high %v5754_v53, %v533_v59 }
 0x1f9   :  { %v5822_v27 = vrot.slane %v1240_v48, %v5656_v40  ;;  %v5832_v58 = vrot.slane %v6918_v5, %v5656_v40  ;;  %v5835_v62 = vrot.slane %v1241_v28, %v5656_v40  ;;  %v6919_v48 = vcombine.high %v5428_v18, %v5444_v26 }
 0x1fa   :  { %v1256_v32 = vcombine.low %v1191_v45, %v1207_v47  ;;  %v1257_v56 = vcombine.high %v1191_v45, %v1207_v47  ;;  %v1336_v45 = vrot.slane %v1328_v30, %v5409_v4  ;;  %v1472_v47 = vrot.slane %v1464_v34, %v5409_v4 }
 0x1fb   :  { %v5841_v55 = vrot.slane %v6919_v48, %v5656_v40  ;;  %v1304_v30 = vcombine.low %v5822_v27, %v5832_v58  ;;  %v1313_v26 = vcombine.high %v5627_v31, %v5637_v22  ;;  %v6921_v53 = vcombine.low %v5570_v42, %v5576_v1 }
 0x1fc   :  { %v5847_v5 = vrot.slane %v1256_v32, %v5656_v40  ;;  %v5850_v28 = vrot.slane %v1257_v56, %v5656_v40  ;;  %v1376_v34 = vcombine.low %v1320_v15, %v1336_v45  ;;  %v6920_v56 = vcombine.low %v5500_v2, %v5516_v8 }
 0x1fd   :  { %v1512_v50 = vcombine.low %v1456_v6, %v1472_v47  ;;  %v1513_v49 = vcombine.high %v1456_v6, %v1472_v47  ;;  %v1329_v22 = vcombine.high %v5635_v37, %v5734_v17  ;;  %v1479_v31 = vrot.slane %v1465_v19, %v5409_v4 }
 0x1fe   :  { %v1416_v32 = vrot.slane %v6920_v56, %v5656_v40  ;;  %v1377_v56 = vcombine.high %v1320_v15, %v1336_v45  ;;  %v6923_v37 = vcombine.high %v5570_v42, %v5576_v1  ;;  %v6924_v45 = vmov 0.0  }
 0x1ff   :  { %v1520_v15 = vrot.slane %v1512_v50, %v5656_v40  ;;  %v1343_v19 = vrot.slane %v1329_v22, %v5409_v4 }
 0x200   :  { %v1559_v17 = vrot.slane %v6923_v37, %v5656_v40  ;;  %v1391_v50 = vrot.slane %v1377_v56, %v5656_v40 }
 0x203   :  { %v5803_v36 = vpop.f32.mrf.mxu1 }
 0x205   :  { %v748_v60 = vpop.f32.mrf.mxu1 }
 0x207   :  { %v5810_v61 = vpop.f32.mrf.mxu1 }
 0x209   :  { %v758_v51 = vpop.f32.mrf.mxu1 }
 0x20b   :  { %v5814_v10 = vpop.f32.mrf.mxu1 }
 0x20d   :  { %v768_v23 = vpop.f32.mrf.mxu1 }
 0x20e   :  { %v1584_v41 = vcombine.low %v748_v60, %v768_v23  ;;  %v1585_v57 = vcombine.high %v748_v60, %v768_v23  ;;  %v1384_v23 = vrot.slane %v1376_v34, %v5656_v40 }
 0x20f   :  { %v5826_v3 = vpop.f32.mrf.mxu1 }
 0x210   :  { %v1592_v44 = vrot.slane %v1584_v41, %v5409_v4  ;;  %v1449_v41 = vcombine.high %v5744_v21, %v5766_v63  ;;  %v1327_v63 = vrot.slane %v1313_v26, %v5409_v4  ;;  %v1599_v21 = vrot.slane %v1585_v57, %v5409_v4 }
 0x211   :  { %v778_v54 = vpop.f32.mrf.mxu1  ;;  %v2076_v22 = vcombine.low %v5810_v61, %v5826_v3 }
 0x212   :  { %v1600_v12 = vcombine.low %v758_v51, %v778_v54  ;;  %v1601_v48 = vcombine.high %v758_v51, %v778_v54  ;;  %v1552_v51 = vrot.slane %v6921_v53, %v5656_v40  ;;  %v6922_v54 = vcombine.high %v5500_v2, %v5516_v8 }
 0x213   :  { %v1527_v8 = vrot.slane %v1513_v49, %v5656_v40  ;;  %v1441_v49 = vcombine.high %v1384_v23, %v1416_v32 }
 0x214   :  { %v1608_v18 = vrot.slane %v1600_v12, %v5409_v4  ;;  %v1423_v59 = vrot.slane %v6922_v54, %v5656_v40  ;;  %v1615_v60 = vrot.slane %v1601_v48, %v5409_v4  ;;  %v1577_v42 = vcombine.high %v1520_v15, %v1552_v51 }
 0x215   :  { %v1579_v1 = vcombine.high %v1527_v8, %v1559_v17  ;;  %v1576_v54 = vcombine.low %v1520_v15, %v1552_v51  ;;  %v1306_v51 = vcombine.low %v5835_v62, %v5841_v55  ;;  %v6925_v15 = vcombine.high %v5822_v27, %v5832_v58 }
 0x216   :  { %v1616_v6 = vcombine.low %v1592_v44, %v1608_v18  ;;  %v1617_v12 = vcombine.high %v1592_v44, %v1608_v18  ;;  %v1463_v44 = vrot.slane %v1449_v41, %v5409_v4  ;;  %v1632_v48 = vcombine.low %v1599_v21, %v1615_v60 }
 0x217   :  { %v1633_v26 = vcombine.high %v1599_v21, %v1615_v60  ;;  %v1578_v41 = vcombine.low %v1527_v8, %v1559_v17  ;;  %v1443_v56 = vcombine.high %v1391_v50, %v1423_v59  ;;  %v6926_v8 = vcombine.high %v5835_v62, %v5841_v55 }
 0x218   :  { %v1624_v47 = vrot.slane %v1616_v6, %v5656_v40  ;;  %v1631_v2 = vrot.slane %v1617_v12, %v5656_v40  ;;  %v1528_v57 = vcombine.low %v1463_v44, %v1479_v31  ;;  %v1529_v53 = vcombine.high %v1463_v44, %v1479_v31 }
 0x219   :  { %v1440_v6 = vcombine.low %v1384_v23, %v1416_v32  ;;  %v1442_v12 = vcombine.low %v1391_v50, %v1423_v59  ;;  %v1640_v60 = vrot.slane %v1632_v48, %v5656_v40  ;;  %v1647_v21 = vrot.slane %v1633_v26, %v5656_v40  ;;  %v5913_v59 = vld [vmem:[%s6873_s2] sm:$0xff] }
 0x21a   :  { %v1648_v18 = vcombine.high %v1624_v47, %v6924_v45  ;;  %v1649_v34 = vcombine.high %v1631_v2, %v6924_v45  ;;  %v1392_v31 = vcombine.low %v1327_v63, %v1343_v19  ;;  %v2060_v32 = vcombine.low %v5803_v36, %v5814_v10 }
 0x21b   :  { %v1536_v23 = vrot.slane %v1528_v57, %v5656_v40  ;;  %v6928_v17 = vcombine.high %v5573_v43, %v5579_v46  ;;  %v2084_v50 = vrot.slane %v2076_v22, %v5409_v4  ;;  %v1650_v55 = vcombine.high %v1640_v60, %v6924_v45 }
 0x21c   :  { %4648 = vmatprep.subr.msk.mxu0 %vm2685_vm0, %v1648_v18  ;;  %4654 = vmatprep.subr.msk.mxu1 %vm2685_vm0, %v1649_v34  ;;  %v6929_v18 = vcombine.low %v5441_v25, %v5447_v29  ;;  %v1651_v62 = vcombine.high %v1647_v21, %v6924_v45  ;;  %v6930_v27 = vcombine.high %v5441_v25, %v5447_v29 }
 0x21d   :  { %4649 = vmatpush1.msk.msra.mxu0 %vm2685_vm0, %v1624_v47  ;;  %4655 = vmatpush1.msk.msra.mxu1 %vm2685_vm0, %v1631_v2  ;;  %v1393_v47 = vcombine.high %v1327_v63, %v1343_v19  ;;  %v1543_v2 = vrot.slane %v1529_v53, %v5656_v40  ;;  %v6927_v63 = vcombine.low %v5573_v43, %v5579_v46 }
 0x21e   :  { %2760 = vmatprep.subr.mxu0 %v1577_v42  ;;  %2849 = vmatprep.subr.mxu1 %v1579_v1  ;;  %v1575_v44 = vrot.slane %v6928_v17, %v5656_v40  ;;  %v5935_v34 = vrot.slane %v6929_v18, %v5656_v40  ;;  %v1400_v43 = vrot.slane %v1392_v31, %v5656_v40 }
 0x21f   :  { %2761 = vmatpush1.msra.mxu0 %v1576_v54  ;;  %2850 = vmatpush1.msra.mxu1 %v1578_v41  ;;  %v1568_v37 = vrot.slane %v6927_v63, %v5656_v40  ;;  %v1407_v46 = vrot.slane %v1393_v47, %v5656_v40  ;;  %v1303_v58 = vrot.slane %v6930_v27, %v5656_v40  ;;  %v5969_v54 = vld [vmem:[%s6873_s2 + $0x8] sm:$0xff] }
 0x220   :  { %2762 = vmatprep.subr.mxu0 %v1441_v49  ;;  %2851 = vmatprep.subr.mxu1 %v1443_v56  ;;  %v1583_v48 = vcombine.high %v1543_v2, %v1575_v44  ;;  %v6931_v49 = vcombine.low %v5513_v7, %v5519_v9  ;;  %v6932_v25 = vcombine.high %v5513_v7, %v5519_v9  ;;  %v5975_v56 = vld [vmem:[#allocation3 + $0x8] sm:$0xff] }
 0x221   :  { %2763 = vmatpush1.msra.mxu0 %v1440_v6  ;;  %2852 = vmatpush1.msra.mxu1 %v1442_v12  ;;  %v1581_v19 = vcombine.high %v1536_v23, %v1568_v37  ;;  %v1580_v26 = vcombine.low %v1536_v23, %v1568_v37  ;;  %v1582_v53 = vcombine.low %v1543_v2, %v1575_v44  ;;  %v5977_v7 = vld [vmem:[#allocation3 + $0x28] sm:$0xff]  ;;  %v5981_v6 = vld [vmem:[#allocation3 + $0x18] sm:$0xff] }
 0x222   :  { %2764 = vmatprep.subr.mxu0 %v6925_v15  ;;  %2853 = vmatprep.subr.mxu1 %v6926_v8  ;;  %v1432_v57 = vrot.slane %v6931_v49, %v5656_v40  ;;  %v1439_v29 = vrot.slane %v6932_v25, %v5656_v40  ;;  %v1940_v41 = vcombine.low %v5746_v20, %v5768_v13  ;;  %v5983_v12 = vld [vmem:[#allocation3 + $0x38] sm:$0xff]  ;;  %v6005_v15 = vld [vmem:[%s6873_s2 + $0x10] sm:$0xff] }
 0x223   :  { %2765 = vmatpush1.msra.mxu0 %v1304_v30  ;;  %2854 = vmatpush1.msra.mxu1 %v1306_v51  ;;  %v2068_v30 = vrot.slane %v2060_v32, %v5409_v4  ;;  %v1652_v9 = vcombine.low %v5975_v56, %v5977_v7  ;;  %v1668_v22 = vcombine.low %v5981_v6, %v5983_v12 }
 0x224   :  { %4650 = vmatmul.mubr.msk.f32.vlgmr.msra.gmra.mxu0 %vm2672_vm1, %v5913_v59  ;;  %4656 = vmatmul.mubr.msk.f32.vlgmr.msra.gmra.mxu1 %vm2672_vm1, %v5913_v59  ;;  %v1445_v13 = vcombine.high %v1400_v43, %v1432_v57  ;;  %v1447_v20 = vcombine.high %v1407_v46, %v1439_v29  ;;  %v1444_v31 = vcombine.low %v1400_v43, %v1432_v57 }
 0x225   :  { %4660 = vmatprep.subr.msk.mxu0 %vm2685_vm0, %v1650_v55  ;;  %4666 = vmatprep.subr.msk.mxu1 %vm2685_vm0, %v1651_v62  ;;  %v2092_v42 = vcombine.low %v2068_v30, %v2084_v50  ;;  %v2093_v1 = vcombine.high %v2068_v30, %v2084_v50  ;;  %v1446_v47 = vcombine.low %v1407_v46, %v1439_v29 }
 0x226   :  { %4661 = vmatpush1.msk.msra.mxu0 %vm2685_vm0, %v1640_v60  ;;  %4667 = vmatpush1.msk.msra.mxu1 %vm2685_vm0, %v1647_v21  ;;  %v1309_v60 = vcombine.high %v5847_v5, %v5935_v34  ;;  %v1924_v21 = vcombine.low %v5736_v24, %v5756_v38  ;;  %v1311_v23 = vcombine.high %v5850_v28, %v1303_v58 }
 0x227   :  { %2938 = vmatprep.subr.mxu0 %v1581_v19  ;;  %3027 = vmatprep.subr.mxu1 %v1583_v48  ;;  %v2100_v51 = vrot.slane %v2092_v42, %v5656_v40  ;;  %v2107_v32 = vrot.slane %v2093_v1, %v5656_v40  ;;  %v1948_v2 = vrot.slane %v1940_v41, %v5409_v4 }
 0x228   :  { %2804 = vmatprep.mubr.f32.mxu0 %v6924_v45  ;;  %2893 = vmatprep.mubr.f32.mxu1 %v6924_v45  ;;  %v1308_v38 = vcombine.low %v5847_v5, %v5935_v34  ;;  %v1310_v24 = vcombine.low %v5850_v28, %v1303_v58  ;;  %v1932_v8 = vrot.slane %v1924_v21, %v5409_v4  ;;  %v6025_v34 = vld [vmem:[%s6873_s2 + $0x18] sm:$0xff]  ;;  %s5194_s2 = smov [#allocation8]  }
 0x229   :  { %2939 = vmatpush1.msra.mxu0 %v1580_v26  ;;  %3028 = vmatpush1.msra.mxu1 %v1582_v53  ;;  %v1660_v63 = vrot.slane %v1652_v9, %v5409_v4  ;;  %v2124_v37 = vcombine.high %v2100_v51, %v6924_v45  ;;  %v2125_v5 = vcombine.high %v2107_v32, %v6924_v45  ;;  %s4603_s20 = sshll.u32 %s5194_s2, 4  ;;  %s4604_s20 = int_to_ptr.vmem [resolvable:$true] %s4603_s20 }
 0x22a   :  { %4651 = vmatmul.mubr.msk.f32.gmra.mxu0 %vm2672_vm1, %v5969_v54  ;;  %4657 = vmatmul.mubr.msk.f32.gmra.mxu1 %vm2672_vm1, %v5969_v54  ;;  %v1676_v28 = vrot.slane %v1668_v22, %v5409_v4  ;;  %v1988_v17 = vcombine.low %v1932_v8, %v1948_v2  ;;  %v1989_v44 = vcombine.high %v1932_v8, %v1948_v2  ;;  %v6945_v2 = vld [vmem:[#allocation21_spill] sm:$0xff]  ;;  %s5160_s21 = scalar_lea.vmem %s4604_s20, 8192  ;;  %p5165_p11 = scmp.lt.s32.totalorder %s4604_s20, %s4604_s20 }
 0x22b   :  { %2940 = vmatprep.subr.mxu0 %v1445_v13  ;;  %3029 = vmatprep.subr.mxu1 %v1447_v20  ;;  %v2077_v18 = vcombine.high %v5810_v61, %v5826_v3  ;;  %v2061_v50 = vcombine.high %v5803_v36, %v5814_v10  ;;  %v6933_v10 = vcombine.low %v5550_v33, %v5556_v35  ;;  %v6948_v8 = vld [vmem:[#allocation13_spill] sm:$0xff]  ;;  %p5161_p10 = scmp.ne.s32.totalorder %s4604_s20, %s5160_s21  ;;  %p5166_p12 = scmp.lt.s32.totalorder %s5160_s21, %s5160_s21 }
 0x22c   :  { %2941 = vmatpush1.msra.mxu0 %v1444_v31  ;;  %3030 = vmatpush1.msra.mxu1 %v1446_v47  ;;  %v1716_v55 = vcombine.low %v1660_v63, %v1676_v28  ;;  %v1996_v61 = vrot.slane %v1988_v17, %v5656_v40  ;;  %v2003_v3 = vrot.slane %v1989_v44, %v5656_v40 }
 0x22d   :  { %2942 = vmatprep.subr.mxu0 %v1309_v60  ;;  %3031 = vmatprep.subr.mxu1 %v1311_v23  ;;  %v2091_v62 = vrot.slane %v2077_v18, %v5409_v4  ;;  %v2028_v36 = vrot.slane %v6933_v10, %v5656_v40  ;;  %v6934_v43 = vcombine.high %v5550_v33, %v5556_v35  ;;  %v6944_v23 = vld [vmem:[#allocation19_spill] sm:$0xff]  ;;  %p5167_p13 = por %p5166_p12, %p5165_p11 }
 0x22e   :  { %2810 = vmatprep.mubr.f32.mxu0 %v6924_v45  ;;  %2899 = vmatprep.mubr.f32.mxu1 %v6924_v45  ;;  %v1717_v27 = vcombine.high %v1660_v63, %v1676_v28  ;;  %v2075_v58 = vrot.slane %v2061_v50, %v5409_v4  ;;  %v1724_v30 = vrot.slane %v1716_v55, %v5656_v40  ;;  %v6953_v50 = vld [vmem:[#allocation14_spill] sm:$0xff]  ;;  %v6954_v55 = vld [vmem:[#allocation16_spill] sm:$0xff] }
 0x22f   :  { %2943 = vmatpush1.msra.mxu0 %v1308_v38  ;;  %3032 = vmatpush1.msra.mxu1 %v1310_v24  ;;  %v2035_v46 = vrot.slane %v6934_v43, %v5656_v40  ;;  %v2053_v19 = vcombine.high %v1996_v61, %v2028_v36  ;;  %v2052_v26 = vcombine.low %v1996_v61, %v2028_v36  ;;  %v6947_v24 = vld [vmem:[#allocation12_spill] sm:$0xff]  ;;  %p5168_p0 = pnand %p5167_p13, %p5161_p10 }
 0x230   :  { %4652 = vmatmul.mubr.msk.f32.gmra.mxu0 %vm2672_vm1, %v6005_v15  ;;  %4658 = vmatmul.mubr.msk.f32.gmra.mxu1 %vm2672_vm1, %v6005_v15  ;;  %v2108_v49 = vcombine.low %v2075_v58, %v2091_v62  ;;  %v2109_v57 = vcombine.high %v2075_v58, %v2091_v62  ;;  %v6935_v35 = vcombine.low %v5414_v11, %v5421_v14  ;;  %v6957_v62 = vld [vmem:[#allocation17_spill] sm:$0xff] }
 0x231   :  { %4672 = vmatprep.subr.msk.mxu0 %vm2685_vm0, %v2124_v37  ;;  %4678 = vmatprep.subr.msk.mxu1 %vm2685_vm0, %v2125_v5  ;;  %v2055_v48 = vcombine.high %v2003_v3, %v2035_v46  ;;  %v2054_v33 = vcombine.low %v2003_v3, %v2035_v46  ;;  %v1731_v29 = vrot.slane %v1717_v27, %v5656_v40  ;;  %v6956_v3 = vld [vmem:[#allocation15_spill] sm:$0xff] }
 0x232   :  { %2816 = vmatprep.mubr.f32.mxu0 %v6924_v45  ;;  %2905 = vmatprep.mubr.f32.mxu1 %v6924_v45  ;;  %v1756_v25 = vrot.slane %v6935_v35, %v5656_v40  ;;  %v6936_v42 = vcombine.high %v5414_v11, %v5421_v14  ;;  %v2116_v53 = vrot.slane %v2108_v49, %v5656_v40 }
 0x233   :  { %v2123_v41 = vrot.slane %v2109_v57, %v5656_v40  ;;  %v6937_v9 = vcombine.high %v5677_v16, %v5668_v39  ;;  %v6938_v22 = vcombine.high %v5680_v52, %v5674_v0  ;;  %v6939_v13 = vcombine.low %v5677_v16, %v5668_v39 }
 0x234   :  { %4653 = vmatmul.mubr.msk.f32.gmra.mxu0 %vm2672_vm1, %v6025_v34  ;;  %4659 = vmatmul.mubr.msk.f32.gmra.mxu1 %vm2672_vm1, %v6025_v34  ;;  %v1763_v1 = vrot.slane %v6936_v42, %v5656_v40  ;;  %v1781_v11 = vcombine.high %v1724_v30, %v1756_v25  ;;  %v6940_v20 = vcombine.low %v5680_v52, %v5674_v0 }
 0x235   :  { %2976 = vmatprep.mubr.f32.mxu0 %v6924_v45  ;;  %3065 = vmatprep.mubr.f32.mxu1 %v6924_v45  ;;  %v1780_v60 = vcombine.low %v1724_v30, %v1756_v25  ;;  %v1653_v31 = vcombine.high %v5975_v56, %v5977_v7  ;;  %v2126_v47 = vcombine.high %v2116_v53, %v6924_v45 }
 0x236   :  { %v1783_v14 = vcombine.high %v1731_v29, %v1763_v1  ;;  %v1782_v21 = vcombine.low %v1731_v29, %v1763_v1  ;;  %v1669_v39 = vcombine.high %v5981_v6, %v5983_v12  ;;  %v6941_v6 = vld [vmem:[#allocation18_spill] sm:$0xff]  ;;  %v6942_v12 = vld [vmem:[#allocation20_spill] sm:$0xff]  ;;  %v6946_v38 = vcombine.high %v6944_v23, %v6945_v2 }
 0x237   :  { %v1667_v0 = vrot.slane %v1653_v31, %v5409_v4  ;;  %v6949_v63 = vcombine.low %v6947_v24, %v6948_v8  ;;  %v6950_v28 = vcombine.high %v6947_v24, %v6948_v8  ;;  %v6951_v44 = vcombine.low %v6941_v6, %v6942_v12 }
 0x238   :  { %4662 = vmatmul.mubr.msk.f32.vlgmr.msra.gmra.mxu0 %vm2672_vm1, %v5913_v59  ;;  %4668 = vmatmul.mubr.msk.f32.vlgmr.msra.gmra.mxu1 %vm2672_vm1, %v5913_v59  ;;  %v1683_v16 = vrot.slane %v1669_v39, %v5409_v4  ;;  %v6952_v18 = vcombine.low %v6944_v23, %v6945_v2  ;;  %v6955_v61 = vcombine.high %v6953_v50, %v6954_v55 }
 0x239   :  { %4673 = vmatpush1.msk.msra.mxu0 %vm2685_vm0, %v2100_v51  ;;  %4679 = vmatpush1.msk.msra.mxu1 %vm2685_vm0, %v2107_v32  ;;  %v2127_v51 = vcombine.high %v2123_v41, %v6924_v45  ;;  %v6943_v32 = vcombine.high %v6941_v6, %v6942_v12  ;;  %v1772_v37 = vrot.slane %v6949_v63, %v5656_v40 }
 0x23a   :  { %3116 = vmatprep.subr.mxu0 %v2053_v19  ;;  %3205 = vmatprep.subr.mxu1 %v2055_v48  ;;  %v1732_v52 = vcombine.low %v1667_v0, %v1683_v16  ;;  %v1733_v56 = vcombine.high %v1667_v0, %v1683_v16  ;;  %v1779_v17 = vrot.slane %v6950_v28, %v5656_v40 }
 0x23b   :  { %3117 = vmatpush1.msra.mxu0 %v2052_v26  ;;  %3206 = vmatpush1.msra.mxu1 %v2054_v33  ;;  %v6958_v10 = vcombine.high %v6956_v3, %v6957_v62  ;;  %v6959_v46 = vcombine.low %v6953_v50, %v6954_v55  ;;  %v6960_v27 = vcombine.low %v6956_v3, %v6957_v62 }
 0x23c   :  { %2982 = vmatprep.mubr.f32.mxu0 %v6924_v45  ;;  %3071 = vmatprep.mubr.f32.mxu1 %v6924_v45  ;;  %v1740_v7 = vrot.slane %v1732_v52, %v5656_v40  ;;  %v1747_v5 = vrot.slane %v1733_v56, %v5656_v40 }
 0x23d   :  { %3118 = vmatprep.subr.mxu0 %v6937_v9  ;;  %3207 = vmatprep.subr.mxu1 %v6938_v22 }
 0x23e   :  { %4663 = vmatmul.mubr.msk.f32.gmra.mxu0 %vm2672_vm1, %v5969_v54  ;;  %4669 = vmatmul.mubr.msk.f32.gmra.mxu1 %vm2672_vm1, %v5969_v54  ;;  %v1785_v36 = vcombine.high %v1740_v7, %v1772_v37  ;;  %v1787_v43 = vcombine.high %v1747_v5, %v1779_v17  ;;  %v1784_v58 = vcombine.low %v1740_v7, %v1772_v37 }
 0x23f   :  { %3119 = vmatpush1.msra.mxu0 %v6939_v13  ;;  %3208 = vmatpush1.msra.mxu1 %v6940_v20  ;;  %v1786_v30 = vcombine.low %v1747_v5, %v1779_v17 }
 0x240   :  { %3120 = vmatprep.subr.mxu0 %v1781_v11  ;;  %3209 = vmatprep.subr.mxu1 %v1783_v14 }
 0x241   :  { %3121 = vmatpush1.msra.mxu0 %v1780_v60  ;;  %3210 = vmatpush1.msra.mxu1 %v1782_v21 }
 0x242   :  { %2988 = vmatprep.mubr.f32.mxu0 %v6924_v45  ;;  %3077 = vmatprep.mubr.f32.mxu1 %v6924_v45 }
 0x243   :  { %4684 = vmatprep.subr.msk.mxu0 %vm2685_vm0, %v2126_v47  ;;  %4690 = vmatprep.subr.msk.mxu1 %vm2685_vm0, %v2127_v51 }
 0x244   :  { %4664 = vmatmul.mubr.msk.f32.gmra.mxu0 %vm2672_vm1, %v6005_v15  ;;  %4670 = vmatmul.mubr.msk.f32.gmra.mxu1 %vm2672_vm1, %v6005_v15 }
 0x245   :  { %2994 = vmatprep.mubr.f32.mxu0 %v6924_v45  ;;  %3083 = vmatprep.mubr.f32.mxu1 %v6924_v45 }
 0x248   :  { %4665 = vmatmul.mubr.msk.f32.gmra.mxu0 %vm2672_vm1, %v6025_v34  ;;  %4671 = vmatmul.mubr.msk.f32.gmra.mxu1 %vm2672_vm1, %v6025_v34 }
 0x249   :  { %3154 = vmatprep.mubr.f32.mxu0 %v6924_v45  ;;  %3243 = vmatprep.mubr.f32.mxu1 %v6924_v45 }
 0x24c   :  { %4674 = vmatmul.mubr.msk.f32.vlgmr.msra.gmra.mxu0 %vm2672_vm1, %v5913_v59  ;;  %4680 = vmatmul.mubr.msk.f32.vlgmr.msra.gmra.mxu1 %vm2672_vm1, %v5913_v59 }
 0x24d   :  { %4685 = vmatpush1.msk.msra.mxu0 %vm2685_vm0, %v2116_v53  ;;  %4691 = vmatpush1.msk.msra.mxu1 %vm2685_vm0, %v2123_v41 }
 0x24e   :  { %3294 = vmatprep.subr.mxu0 %v6943_v32  ;;  %3383 = vmatprep.subr.mxu1 %v6946_v38 }
 0x24f   :  { %3295 = vmatpush1.msra.mxu0 %v6951_v44  ;;  %3384 = vmatpush1.msra.mxu1 %v6952_v18 }
 0x250   :  { %3160 = vmatprep.mubr.f32.mxu0 %v6924_v45  ;;  %3249 = vmatprep.mubr.f32.mxu1 %v6924_v45 }
 0x251   :  { %3296 = vmatprep.subr.mxu0 %v6955_v61  ;;  %3385 = vmatprep.subr.mxu1 %v6958_v10 }
 0x252   :  { %4675 = vmatmul.mubr.msk.f32.gmra.mxu0 %vm2672_vm1, %v5969_v54  ;;  %4681 = vmatmul.mubr.msk.f32.gmra.mxu1 %vm2672_vm1, %v5969_v54 }
 0x253   :  { %3297 = vmatpush1.msra.mxu0 %v6959_v46  ;;  %3386 = vmatpush1.msra.mxu1 %v6960_v27 }
 0x254   :  { %3298 = vmatprep.subr.mxu0 %v1785_v36  ;;  %3387 = vmatprep.subr.mxu1 %v1787_v43 }
 0x255   :  { %3299 = vmatpush1.msra.mxu0 %v1784_v58  ;;  %3388 = vmatpush1.msra.mxu1 %v1786_v30 }
 0x256   :  { %3166 = vmatprep.mubr.f32.mxu0 %v6924_v45  ;;  %3255 = vmatprep.mubr.f32.mxu1 %v6924_v45 }
 0x257   :  { %4676 = vmatmul.mubr.msk.f32.gmra.mxu0 %vm2672_vm1, %v6005_v15  ;;  %4682 = vmatmul.mubr.msk.f32.gmra.mxu1 %vm2672_vm1, %v6005_v15 }
 0x258   :  { %3172 = vmatprep.mubr.f32.mxu0 %v6924_v45  ;;  %3261 = vmatprep.mubr.f32.mxu1 %v6924_v45 }
 0x25b   :  { %4677 = vmatmul.mubr.msk.f32.gmra.mxu0 %vm2672_vm1, %v6025_v34  ;;  %4683 = vmatmul.mubr.msk.f32.gmra.mxu1 %vm2672_vm1, %v6025_v34 }
 0x25c   :  { %3332 = vmatprep.mubr.f32.mxu0 %v6924_v45  ;;  %3421 = vmatprep.mubr.f32.mxu1 %v6924_v45 }
 0x25f   :  { %4686 = vmatmul.mubr.msk.f32.vlgmr.msra.gmra.mxu0 %vm2672_vm1, %v5913_v59  ;;  %4692 = vmatmul.mubr.msk.f32.vlgmr.msra.gmra.mxu1 %vm2672_vm1, %v5913_v59  ;;  %v1058_v59 = vpop.permute.xlu1 %1057 }
 0x260   :  { %3338 = vmatprep.mubr.f32.mxu0 %v6924_v45  ;;  %3427 = vmatprep.mubr.f32.mxu1 %v6924_v45 }
 0x263   :  { %4687 = vmatmul.mubr.msk.f32.gmra.mxu0 %vm2672_vm1, %v5969_v54  ;;  %4693 = vmatmul.mubr.msk.f32.gmra.mxu1 %vm2672_vm1, %v5969_v54  ;;  %v1050_v54 = vpop.permute.xlu0 %1049  ;;  %v1062_v19 = vpop.permute.xlu1 %1061 }
 0x264   :  { %3344 = vmatprep.mubr.f32.mxu0 %v6924_v45  ;;  %3433 = vmatprep.mubr.f32.mxu1 %v6924_v45  ;;  %v2128_v60 = vcombine.low %v1050_v54, %v1058_v59  ;;  %v2129_v7 = vcombine.high %v1050_v54, %v1058_v59 }
 0x266   :  { %v6212_v0 = vrot.slane %v2128_v60, %v5409_v4  ;;  %v6232_v28 = vrot.slane %v2129_v7, %v5409_v4 }
 0x267   :  { %4688 = vmatmul.mubr.msk.f32.gmra.mxu0 %vm2672_vm1, %v6005_v15  ;;  %4694 = vmatmul.mubr.msk.f32.gmra.mxu1 %vm2672_vm1, %v6005_v15  ;;  %v1054_v48 = vpop.permute.xlu0 %1053  ;;  %v1070_v26 = vpop.permute.xlu1 %1069 }
 0x268   :  { %3350 = vmatprep.mubr.f32.mxu0 %v6924_v45  ;;  %3439 = vmatprep.mubr.f32.mxu1 %v6924_v45  ;;  %v2144_v21 = vcombine.low %v1054_v48, %v1062_v19  ;;  %v2145_v6 = vcombine.high %v1054_v48, %v1062_v19 }
 0x26a   :  { %v6215_v16 = vrot.slane %v2144_v21, %v5409_v4  ;;  %v6235_v17 = vrot.slane %v2145_v6, %v5409_v4 }
 0x26b   :  { %4689 = vmatmul.mubr.msk.f32.gmra.mxu0 %vm2672_vm1, %v6025_v34  ;;  %4695 = vmatmul.mubr.msk.f32.gmra.mxu1 %vm2672_vm1, %v6025_v34  ;;  %v1066_v49 = vpop.permute.xlu0 %1065  ;;  %v1078_v57 = vpop.permute.xlu1 %1077 }
 0x26c   :  { %v2176_v31 = vcombine.low %v1070_v26, %v1078_v57  ;;  %v2192_v12 = vcombine.low %v6212_v0, %v6215_v16  ;;  %v2177_v32 = vcombine.high %v1070_v26, %v1078_v57  ;;  %v2193_v59 = vcombine.high %v6212_v0, %v6215_v16 }
 0x26d   :  { %v2208_v54 = vcombine.low %v6232_v28, %v6235_v17  ;;  %v2209_v26 = vcombine.high %v6232_v28, %v6235_v17 }
 0x26e   :  { %v6218_v52 = vrot.slane %v2176_v31, %v5409_v4  ;;  %v6238_v50 = vrot.slane %v2177_v32, %v5409_v4  ;;  %v6241_v55 = vrot.slane %v2192_v12, %v5656_v40 }
 0x26f   :  { %v1074_v33 = vpop.permute.xlu0 %1073  ;;  %v1086_v35 = vpop.permute.xlu1 %1085 }
 0x270   :  { %v2160_v47 = vcombine.low %v1066_v49, %v1074_v33  ;;  %v2161_v38 = vcombine.high %v1066_v49, %v1074_v33 }
 0x272   :  { %v6221_v56 = vrot.slane %v2160_v47, %v5409_v4  ;;  %v6244_v61 = vrot.slane %v2161_v38, %v5409_v4 }
 0x273   :  { %v1082_v15 = vpop.permute.xlu0 %1081  ;;  %v1094_v25 = vpop.permute.xlu1 %1093 }
 0x274   :  { %v2224_v24 = vcombine.low %v6221_v56, %v6218_v52  ;;  %v2280_v8 = vcombine.low %v1086_v35, %v1094_v25  ;;  %v2281_v63 = vcombine.high %v1086_v35, %v1094_v25  ;;  %v2225_v49 = vcombine.high %v6221_v56, %v6218_v52 }
 0x275   :  { %v2240_v35 = vcombine.low %v6244_v61, %v6238_v50 }
 0x276   :  { %v6247_v10 = vrot.slane %v2224_v24, %v5656_v40  ;;  %v6250_v36 = vrot.slane %v2280_v8, %v5409_v4  ;;  %v6253_v43 = vrot.slane %v2281_v63, %v5409_v4 }
 0x277   :  { %v1090_v29 = vpop.permute.xlu0 %1089  ;;  %v1102_v42 = vpop.permute.xlu1 %1101 }
 0x278   :  { %v2264_v37 = vcombine.low %v1082_v15, %v1090_v29  ;;  %v2265_v5 = vcombine.high %v1082_v15, %v1090_v29  ;;  %v2241_v15 = vcombine.high %v6244_v61, %v6238_v50 }
 0x27a   :  { %v6256_v46 = vrot.slane %v2264_v37, %v5409_v4  ;;  %v6259_v27 = vrot.slane %v2265_v5, %v5409_v4 }
 0x27b   :  { %v1098_v45 = vpop.permute.xlu0 %1097  ;;  %v1110_v1 = vpop.permute.xlu1 %1109 }
 0x27c   :  { %v2312_v44 = vcombine.low %v1102_v42, %v1110_v1  ;;  %v2313_v3 = vcombine.high %v1102_v42, %v1110_v1  ;;  %v2328_v42 = vcombine.low %v6256_v46, %v6250_v36  ;;  %v2344_v1 = vcombine.low %v6259_v27, %v6253_v43 }
 0x27d   :  { %v2345_v60 = vcombine.high %v6259_v27, %v6253_v43 }
 0x27e   :  { %v6270_v19 = vrot.slane %v2312_v44, %v5409_v4  ;;  %v6288_v25 = vrot.slane %v2313_v3, %v5409_v4  ;;  %v2352_v50 = vrot.slane %v2344_v1, %v5656_v40 }
 0x27f   :  { %v1106_v53 = vpop.permute.xlu0 %1105  ;;  %v6191_v41 = vpop.permute.xlu1 %1117 }
 0x280   :  { %v2296_v18 = vcombine.low %v1098_v45, %v1106_v53  ;;  %v2297_v62 = vcombine.high %v1098_v45, %v1106_v53  ;;  %v2329_v45 = vcombine.high %v6256_v46, %v6250_v36  ;;  %v6301_v53 = vcombine.low %v6241_v55, %v6247_v10 }
 0x281   :  { %v2207_v36 = vrot.slane %v2193_v59, %v5656_v40  ;;  %v2239_v46 = vrot.slane %v2225_v49, %v5656_v40 }
 0x282   :  { %v6273_v48 = vrot.slane %v2296_v18, %v5409_v4  ;;  %v6291_v29 = vrot.slane %v2297_v62, %v5409_v4 }
 0x283   :  { %v6193_v9 = vpop.permute.xlu0 %1113  ;;  %v6195_v34 = vpop.permute.xlu1 %1125 }
 0x284   :  { %v2416_v57 = vcombine.low %v6191_v41, %v6195_v34  ;;  %v2360_v21 = vcombine.low %v6273_v48, %v6270_v19  ;;  %v2417_v31 = vcombine.high %v6191_v41, %v6195_v34  ;;  %v2361_v12 = vcombine.high %v6273_v48, %v6270_v19 }
 0x285   :  { %v2376_v41 = vcombine.low %v6291_v29, %v6288_v25  ;;  %v2377_v8 = vcombine.high %v6291_v29, %v6288_v25 }
 0x286   :  { %v2424_v0 = vrot.slane %v2416_v57, %v5409_v4 }
 0x287   :  { %v6197_v22 = vpop.permute.xlu0 %1121  ;;  %v6199_v11 = vpop.permute.xlu1 %1133  ;;  %v2384_v61 = vrot.slane %v2376_v41, %v5656_v40 }
 0x288   :  { %v2400_v33 = vcombine.low %v6193_v9, %v6197_v22  ;;  %v2401_v47 = vcombine.high %v6193_v9, %v6197_v22 }
 0x28a   :  { %v2408_v16 = vrot.slane %v2400_v33, %v5409_v4 }
 0x28b   :  { %v6201_v14 = vpop.permute.xlu0 %1129  ;;  %v6203_v13 = vpop.permute.xlu1 %1141 }
 0x28c   :  { %v2448_v52 = vcombine.low %v6199_v11, %v6203_v13  ;;  %v2449_v9 = vcombine.high %v6199_v11, %v6203_v13  ;;  %v6336_v11 = vrot.slane %v2417_v31, %v5409_v4  ;;  %v2465_v48 = vcombine.high %v2408_v16, %v2424_v0 }
 0x28f   :  { %v6205_v20 = vpop.permute.xlu0 %1137  ;;  %v6207_v51 = vpop.permute.xlu1 %1149 }
 0x290   :  { %v2432_v56 = vcombine.low %v6201_v14, %v6205_v20  ;;  %v2433_v34 = vcombine.high %v6201_v14, %v6205_v20  ;;  %v6341_v20 = vrot.slane %v2401_v47, %v5409_v4 }
 0x292   :  { %v2440_v63 = vrot.slane %v2432_v56, %v5409_v4  ;;  %v2481_v57 = vcombine.high %v6341_v20, %v6336_v11 }
 0x293   :  { %v6209_v39 = vpop.permute.xlu0 %1145  ;;  %v6225_v23 = vpop.permute.xlu1 %1157 }
 0x294   :  { %v2552_v22 = vcombine.low %v6207_v51, %v6225_v23  ;;  %v2553_v32 = vcombine.high %v6207_v51, %v6225_v23  ;;  %v2464_v51 = vcombine.low %v2408_v16, %v2424_v0  ;;  %v2456_v23 = vrot.slane %v2448_v52, %v5409_v4 }
 0x296   :  { %v2560_v44 = vrot.slane %v2552_v22, %v5409_v4  ;;  %v6355_v18 = vrot.slane %v2553_v32, %v5409_v4  ;;  %v2496_v33 = vcombine.low %v2440_v63, %v2456_v23  ;;  %v2497_v31 = vcombine.high %v2440_v63, %v2456_v23 }
 0x297   :  { %v6227_v2 = vpop.permute.xlu0 %1153  ;;  %v6261_v58 = vpop.permute.xlu1 %1165  ;;  %v2336_v22 = vrot.slane %v2328_v42, %v5656_v40  ;;  %v2368_v32 = vrot.slane %v2360_v21, %v5656_v40  ;;  %v6395_v23 = vcombine.high %v6241_v55, %v6247_v10  ;;  %v6397_v63 = vcombine.high %v2207_v36, %v2239_v46 }
 0x298   :  { %v2536_v38 = vcombine.low %v6209_v39, %v6227_v2  ;;  %v2537_v24 = vcombine.high %v6209_v39, %v6227_v2  ;;  %v6346_v39 = vrot.slane %v2449_v9, %v5409_v4  ;;  %v6349_v2 = vrot.slane %v2433_v34, %v5409_v4 }
 0x299   :  { %v2472_v42 = vrot.slane %v2464_v51, %v5656_v40  ;;  %v2504_v21 = vrot.slane %v2496_v33, %v5656_v40  ;;  %v6407_v55 = vcombine.low %v2336_v22, %v2368_v32 }
 0x29a   :  { %v2544_v3 = vrot.slane %v2536_v38, %v5409_v4  ;;  %v6359_v62 = vrot.slane %v2537_v24, %v5409_v4  ;;  %v2512_v47 = vcombine.low %v6349_v2, %v6346_v39  ;;  %v2513_v0 = vcombine.high %v6349_v2, %v6346_v39 }
 0x29b   :  { %v6263_v30 = vpop.permute.xlu0 %1161  ;;  %v1174_v7 = vpop.permute.xlu1 %1173  ;;  %v2343_v38 = vrot.slane %v2329_v45, %v5656_v40  ;;  %v2375_v24 = vrot.slane %v2361_v12, %v5656_v40  ;;  %v2479_v45 = vrot.slane %v2465_v48, %v5656_v40  ;;  %v2511_v12 = vrot.slane %v2497_v31, %v5656_v40 }
 0x29c   :  { %v2584_v14 = vcombine.low %v6261_v58, %v1174_v7  ;;  %v2585_v37 = vcombine.high %v6261_v58, %v1174_v7  ;;  %v2600_v16 = vcombine.low %v2544_v3, %v2560_v44  ;;  %v2601_v52 = vcombine.high %v2544_v3, %v2560_v44 }
 0x29d   :  { %v2616_v56 = vcombine.low %v6359_v62, %v6355_v18  ;;  %v2617_v7 = vcombine.high %v6359_v62, %v6355_v18  ;;  %v6409_v10 = vcombine.low %v2343_v38, %v2375_v24  ;;  %v6413_v51 = vcombine.high %v2343_v38, %v2375_v24 }
 0x29e   :  { %v2592_v19 = vrot.slane %v2584_v14, %v5409_v4  ;;  %v6372_v59 = vrot.slane %v2585_v37, %v5409_v4  ;;  %v2608_v37 = vrot.slane %v2600_v16, %v5656_v40  ;;  %v2615_v44 = vrot.slane %v2601_v52, %v5656_v40 }
 0x29f   :  { %v1170_v6 = vpop.permute.xlu0 %1169  ;;  %v2255_v48 = vrot.slane %v2241_v15, %v5656_v40  ;;  %v6431_v33 = vcombine.low %v2472_v42, %v2504_v21  ;;  %v6433_v31 = vcombine.low %v2479_v45, %v2511_v12  ;;  %v2359_v15 = vrot.slane %v2345_v60, %v5656_v40 }
 0x2a0   :  { %v2568_v13 = vcombine.low %v6263_v30, %v1170_v6  ;;  %v2569_v5 = vcombine.high %v6263_v30, %v1170_v6  ;;  %v2480_v30 = vcombine.low %v6341_v20, %v6336_v11  ;;  %v6383_v6 = vcombine.low %v2207_v36, %v2239_v46 }
 0x2a1   :  { %v6411_v36 = vcombine.high %v2336_v22, %v2368_v32  ;;  %v2216_v46 = vrot.slane %v2208_v54, %v5656_v40  ;;  %v6435_v54 = vcombine.high %v2472_v42, %v2504_v21  ;;  %v2391_v52 = vrot.slane %v2377_v8, %v5656_v40 }
 0x2a2   :  { %v2576_v58 = vrot.slane %v2568_v13, %v5409_v4  ;;  %v6375_v49 = vrot.slane %v2569_v5, %v5409_v4  ;;  %v2488_v43 = vrot.slane %v2480_v30, %v5656_v40  ;;  %v2520_v27 = vrot.slane %v2512_v47, %v5656_v40 }
 0x2a3   :  { %v2495_v8 = vrot.slane %v2481_v57, %v5656_v40  ;;  %v6481_v42 = vcombine.low %v2352_v50, %v2384_v61  ;;  %v6483_v21 = vcombine.low %v2359_v15, %v2391_v52  ;;  %v2527_v30 = vrot.slane %v2513_v0, %v5656_v40 }
 0x2a4   :  { %v2632_v9 = vcombine.low %v2576_v58, %v2592_v19  ;;  %v2633_v34 = vcombine.high %v2576_v58, %v2592_v19  ;;  %v2648_v14 = vcombine.low %v6375_v49, %v6372_v59  ;;  %v2649_v13 = vcombine.high %v6375_v49, %v6372_v59 }
 0x2a5   :  { %v2248_v19 = vrot.slane %v2240_v35, %v5656_v40  ;;  %v2223_v58 = vrot.slane %v2209_v26, %v5656_v40  ;;  %v6437_v59 = vcombine.high %v2479_v45, %v2511_v12  ;;  %v6485_v45 = vcombine.high %v2352_v50, %v2384_v61 }
 0x2a6   :  { %v2640_v5 = vrot.slane %v2632_v9, %v5656_v40  ;;  %v2647_v3 = vrot.slane %v2633_v34, %v5656_v40  ;;  %v2624_v11 = vrot.slane %v2616_v56, %v5656_v40  ;;  %v2656_v20 = vrot.slane %v2648_v14, %v5656_v40 }
 0x2a7   :  { %6961 = vst [vmem:[#allocation18_spill] sm:$0xff] %v6437_v59  ;;  %v6465_v1 = vcombine.low %v2216_v46, %v2248_v19  ;;  %v6467_v22 = vcombine.low %v2223_v58, %v2255_v48  ;;  %v6469_v38 = vcombine.high %v2216_v46, %v2248_v19  ;;  %v6471_v24 = vcombine.high %v2223_v58, %v2255_v48 }
 0x2a8   :  { %v6439_v49 = vcombine.low %v2608_v37, %v2640_v5  ;;  %v6441_v35 = vcombine.low %v2615_v44, %v2647_v3  ;;  %v6443_v16 = vcombine.high %v2608_v37, %v2640_v5  ;;  %v6445_v28 = vcombine.high %v2615_v44, %v2647_v3 }
 0x2a9   :  { %6966 = vst [vmem:[#allocation13_spill] sm:$0xff] %v6465_v1  ;;  %6967 = vst [vmem:[#allocation14_spill] sm:$0xff] %v6467_v22  ;;  %v6491_v5 = vcombine.high %v2359_v15, %v2391_v52  ;;  %v2631_v39 = vrot.slane %v2617_v7, %v5656_v40  ;;  %v2663_v2 = vrot.slane %v2649_v13, %v5656_v40 }
 0x2aa   :  { %6962 = vst [vmem:[#allocation20_spill] sm:$0xff] %v6439_v49  ;;  %6963 = vst [vmem:[#allocation19_spill] sm:$0xff] %v6441_v35  ;;  %v6508_v14 = vcombine.low %v2488_v43, %v2520_v27  ;;  %v6512_v18 = vcombine.high %v2488_v43, %v2520_v27 }
 0x2ab   :  { %6964 = vst [vmem:[#allocation21_spill] sm:$0xff] %v6443_v16  ;;  %6965 = vst [vmem:[#allocation12_spill] sm:$0xff] %v6445_v28 }
 0x2ac   :  { %6968 = vst [vmem:[#allocation16_spill] sm:$0xff] %v6469_v38  ;;  %6969 = vst [vmem:[#allocation15_spill] sm:$0xff] %v6471_v24 }
 0x2ad   :  { %6970 = vst [vmem:[#allocation17_spill] sm:$0xff] %v6491_v5 }
 0x2e4   :  { %v2800_v17 = vpop.f32.mrf.mxu0  ;;  %v2889_v26 = vpop.f32.mrf.mxu1 }
 0x2e5   :  { %v2801_v9 = vadd.f32 %v2800_v17, %v6301_v53  ;;  %v2890_v34 = vadd.f32 %v2889_v26, %v6383_v6  ;;  %v6510_v17 = vcombine.low %v2495_v8, %v2527_v30  ;;  %v6515_v26 = vcombine.high %v2495_v8, %v2527_v30 }
 0x2e6   :  { %v2802_v32 = vpop.f32.mrf.mxu0  ;;  %v2891_v41 = vpop.f32.mrf.mxu1 }
 0x2e7   :  { %v3446_v25 = vcombine.low %v2801_v9, %v2890_v34  ;;  %v2803_v29 = vadd.f32 %v2802_v32, %v6395_v23  ;;  %v2892_v60 = vadd.f32 %v2891_v41, %v6397_v63  ;;  %v3447_v47 = vcombine.high %v2801_v9, %v2890_v34 }
 0x2e8   :  { %v6519_v9 = vcombine.low %v2624_v11, %v2656_v20  ;;  %v6521_v34 = vcombine.low %v2631_v39, %v2663_v2  ;;  %v6523_v32 = vcombine.high %v2624_v11, %v2656_v20  ;;  %v6525_v41 = vcombine.high %v2631_v39, %v2663_v2 }
 0x2e9   :  { %v3462_v12 = vcombine.low %v2803_v29, %v2892_v60  ;;  %v3463_v37 = vcombine.high %v2803_v29, %v2892_v60  ;;  %v3454_v57 = vrot.slane %v3446_v25, %v5409_v4  ;;  %v3461_v62 = vrot.slane %v3447_v47, %v5409_v4 }
 0x2ea   :  { %v2806_v44 = vpop.f32.mrf.mxu0  ;;  %v2895_v3 = vpop.f32.mrf.mxu1 }
 0x2eb   :  { %v3470_v0 = vrot.slane %v3462_v12, %v5409_v4  ;;  %v2807_v46 = vadd.f32 %v2806_v44, %v6407_v55  ;;  %v2896_v19 = vadd.f32 %v2895_v3, %v6409_v10  ;;  %v3477_v58 = vrot.slane %v3463_v37, %v5409_v4 }
 0x2ec   :  { %v2808_v56 = vpop.f32.mrf.mxu0  ;;  %v2897_v48 = vpop.f32.mrf.mxu1 }
 0x2ed   :  { %v3510_v7 = vcombine.low %v3454_v57, %v3470_v0  ;;  %v3511_v13 = vcombine.high %v3454_v57, %v3470_v0  ;;  %v3718_v50 = vcombine.low %v2807_v46, %v2896_v19  ;;  %v3719_v61 = vcombine.high %v2807_v46, %v2896_v19 }
 0x2ee   :  { %v2809_v15 = vadd.f32 %v2808_v56, %v6411_v36  ;;  %v2898_v52 = vadd.f32 %v2897_v48, %v6413_v51  ;;  %v3526_v43 = vcombine.low %v3461_v62, %v3477_v58  ;;  %v3527_v27 = vcombine.high %v3461_v62, %v3477_v58 }
 0x2ef   :  { %v6528_v30 = vrot.slane %v3510_v7, %v5656_v40  ;;  %v6531_v47 = vrot.slane %v3511_v13, %v5656_v40  ;;  %v3726_v44 = vrot.slane %v3718_v50, %v5409_v4  ;;  %v3733_v3 = vrot.slane %v3719_v61, %v5409_v4 }
 0x2f0   :  { %v3734_v25 = vcombine.low %v2809_v15, %v2898_v52  ;;  %v3735_v29 = vcombine.high %v2809_v15, %v2898_v52  ;;  %v2812_v60 = vpop.f32.mrf.mxu0  ;;  %v2901_v8 = vpop.f32.mrf.mxu1  ;;  %v6542_v50 = vrot.slane %v3526_v43, %v5656_v40  ;;  %v6545_v61 = vrot.slane %v3527_v27, %v5656_v40 }
 0x2f1   :  { %v2813_v12 = vadd.f32 %v2812_v60, %v6431_v33  ;;  %v2902_v37 = vadd.f32 %v2901_v8, %v6433_v31 }
 0x2f2   :  { %v3742_v11 = vrot.slane %v3734_v25, %v5409_v4  ;;  %v3749_v20 = vrot.slane %v3735_v29, %v5409_v4  ;;  %v2814_v39 = vpop.f32.mrf.mxu0  ;;  %v2903_v2 = vpop.f32.mrf.mxu1 }
 0x2f3   :  { %v3990_v57 = vcombine.low %v2813_v12, %v2902_v37  ;;  %v3991_v0 = vcombine.high %v2813_v12, %v2902_v37  ;;  %v2815_v46 = vadd.f32 %v2814_v39, %v6435_v54  ;;  %v2904_v19 = vadd.f32 %v2903_v2, %v6437_v59 }
 0x2f4   :  { %v3782_v58 = vcombine.low %v3726_v44, %v3742_v11  ;;  %v3783_v56 = vcombine.high %v3726_v44, %v3742_v11  ;;  %v3798_v48 = vcombine.low %v3733_v3, %v3749_v20  ;;  %v3799_v62 = vcombine.high %v3733_v3, %v3749_v20  ;;  %v2818_v7 = vpop.f32.mrf.mxu0  ;;  %v2907_v13 = vpop.f32.mrf.mxu1 }
 0x2f5   :  { %v4006_v15 = vcombine.low %v2815_v46, %v2904_v19  ;;  %v4007_v52 = vcombine.high %v2815_v46, %v2904_v19  ;;  %v3998_v60 = vrot.slane %v3990_v57, %v5409_v4  ;;  %v4005_v8 = vrot.slane %v3991_v0, %v5409_v4 }
 0x2f6   :  { %v6548_v25 = vrot.slane %v3782_v58, %v5656_v40  ;;  %v6551_v29 = vrot.slane %v3783_v56, %v5656_v40  ;;  %v2820_v12 = vpop.f32.mrf.mxu0  ;;  %v2909_v37 = vpop.f32.mrf.mxu1  ;;  %v2819_v27 = vadd.f32 %v2818_v7, %v6439_v49  ;;  %v2908_v3 = vadd.f32 %v2907_v13, %v6441_v35 }
 0x2f7   :  { %v4014_v43 = vrot.slane %v4006_v15, %v5409_v4  ;;  %v4021_v44 = vrot.slane %v4007_v52, %v5409_v4  ;;  %v6560_v11 = vrot.slane %v3798_v48, %v5656_v40  ;;  %v6563_v20 = vrot.slane %v3799_v62, %v5656_v40 }
 0x2f8   :  { %v2821_v39 = vadd.f32 %v2820_v12, %v6443_v16  ;;  %v2910_v2 = vadd.f32 %v2909_v37, %v6445_v28  ;;  %v2978_v57 = vpop.f32.mrf.mxu0  ;;  %v3067_v0 = vpop.f32.mrf.mxu1  ;;  %v4262_v15 = vcombine.low %v2819_v27, %v2908_v3  ;;  %v4263_v7 = vcombine.high %v2819_v27, %v2908_v3 }
 0x2f9   :  { %v4054_v46 = vcombine.low %v3998_v60, %v4014_v43  ;;  %v4055_v19 = vcombine.high %v3998_v60, %v4014_v43  ;;  %v4070_v58 = vcombine.low %v4005_v8, %v4021_v44  ;;  %v4071_v56 = vcombine.high %v4005_v8, %v4021_v44 }
 0x2fa   :  { %v4278_v52 = vcombine.low %v2821_v39, %v2910_v2  ;;  %v4279_v13 = vcombine.high %v2821_v39, %v2910_v2  ;;  %v2980_v35 = vpop.f32.mrf.mxu0  ;;  %v3069_v48 = vpop.f32.mrf.mxu1  ;;  %v4270_v60 = vrot.slane %v4262_v15, %v5409_v4  ;;  %v4277_v8 = vrot.slane %v4263_v7, %v5409_v4 }
 0x2fb   :  { %v6568_v49 = vrot.slane %v4054_v46, %v5656_v40  ;;  %v6571_v62 = vrot.slane %v4055_v19, %v5656_v40  ;;  %v6574_v12 = vrot.slane %v4070_v58, %v5656_v40  ;;  %v6577_v37 = vrot.slane %v4071_v56, %v5656_v40 }
 0x2fc   :  { %v4286_v43 = vrot.slane %v4278_v52, %v5409_v4  ;;  %v4293_v44 = vrot.slane %v4279_v13, %v5409_v4  ;;  %v2979_v27 = vadd.f32 %v2978_v57, %v6465_v1  ;;  %v3068_v3 = vadd.f32 %v3067_v0, %v6467_v22 }
 0x2fd   :  { %v2981_v39 = vadd.f32 %v2980_v35, %v6469_v38  ;;  %v3070_v2 = vadd.f32 %v3069_v48, %v6471_v24 }
 0x2fe   :  { %v4326_v46 = vcombine.low %v4270_v60, %v4286_v43  ;;  %v4327_v19 = vcombine.high %v4270_v60, %v4286_v43  ;;  %v4342_v58 = vcombine.low %v4277_v8, %v4293_v44  ;;  %v4343_v56 = vcombine.high %v4277_v8, %v4293_v44  ;;  %v2984_v28 = vpop.f32.mrf.mxu0  ;;  %v3073_v15 = vpop.f32.mrf.mxu1 }
 0x2ff   :  { %v3478_v16 = vcombine.low %v2979_v27, %v3068_v3  ;;  %v3479_v7 = vcombine.high %v2979_v27, %v3068_v3  ;;  %v3494_v59 = vcombine.low %v2981_v39, %v3070_v2  ;;  %v3495_v52 = vcombine.high %v2981_v39, %v3070_v2 }
 0x300   :  { %v6588_v13 = vrot.slane %v4326_v46, %v5656_v40  ;;  %v6591_v57 = vrot.slane %v4327_v19, %v5656_v40  ;;  %v6594_v35 = vrot.slane %v4342_v58, %v5656_v40  ;;  %v6597_v0 = vrot.slane %v4343_v56, %v5656_v40  ;;  %v2986_v48 = vpop.f32.mrf.mxu0  ;;  %v3075_v60 = vpop.f32.mrf.mxu1 }
 0x301   :  { %v3486_v8 = vrot.slane %v3478_v16, %v5409_v4  ;;  %v3493_v43 = vrot.slane %v3479_v7, %v5409_v4  ;;  %v3502_v44 = vrot.slane %v3494_v59, %v5409_v4  ;;  %v3509_v27 = vrot.slane %v3495_v52, %v5409_v4 }
 0x302   :  { %v2985_v3 = vadd.f32 %v2984_v28, %v6481_v42  ;;  %v3074_v39 = vadd.f32 %v3073_v15, %v6483_v21  ;;  %v2987_v2 = vadd.f32 %v2986_v48, %v6485_v45  ;;  %v3076_v46 = vadd.f32 %v3075_v60, %v6491_v5 }
 0x303   :  { %v3542_v19 = vcombine.low %v3486_v8, %v3502_v44  ;;  %v3543_v58 = vcombine.high %v3486_v8, %v3502_v44  ;;  %v3558_v56 = vcombine.low %v3493_v43, %v3509_v27  ;;  %v3559_v24 = vcombine.high %v3493_v43, %v3509_v27 }
 0x304   :  { %v3750_v38 = vcombine.low %v2985_v3, %v3074_v39  ;;  %v3751_v16 = vcombine.high %v2985_v3, %v3074_v39  ;;  %v3766_v22 = vcombine.low %v2987_v2, %v3076_v46  ;;  %v3767_v7 = vcombine.high %v2987_v2, %v3076_v46  ;;  %v2990_v1 = vpop.f32.mrf.mxu0  ;;  %v3079_v59 = vpop.f32.mrf.mxu1 }
 0x305   :  { %v3550_v52 = vrot.slane %v3542_v19, %v5656_v40  ;;  %v3557_v28 = vrot.slane %v3543_v58, %v5656_v40  ;;  %v3566_v15 = vrot.slane %v3558_v56, %v5656_v40  ;;  %v3573_v48 = vrot.slane %v3559_v24, %v5656_v40 }
 0x306   :  { %v3758_v60 = vrot.slane %v3750_v38, %v5409_v4  ;;  %v3765_v8 = vrot.slane %v3751_v16, %v5409_v4  ;;  %v3774_v43 = vrot.slane %v3766_v22, %v5409_v4  ;;  %v3781_v44 = vrot.slane %v3767_v7, %v5409_v4  ;;  %v2992_v27 = vpop.f32.mrf.mxu0  ;;  %v3081_v3 = vpop.f32.mrf.mxu1 }
 0x307   :  { %v3574_v39 = vcombine.low %v6528_v30, %v3550_v52  ;;  %v3575_v2 = vcombine.high %v6528_v30, %v3550_v52  ;;  %v3576_v46 = vcombine.low %v6531_v47, %v3557_v28  ;;  %v3577_v19 = vcombine.high %v6531_v47, %v3557_v28 }
 0x308   :  { %v3578_v24 = vcombine.low %v6542_v50, %v3566_v15  ;;  %v3579_v38 = vcombine.high %v6542_v50, %v3566_v15  ;;  %v3580_v58 = vcombine.low %v6545_v61, %v3573_v48  ;;  %v3581_v22 = vcombine.high %v6545_v61, %v3573_v48  ;;  %v2996_v56 = vpop.f32.mrf.mxu0  ;;  %v3085_v16 = vpop.f32.mrf.mxu1 }
 0x309   :  { %4534 = vst [vmem:[#allocation8] sm:$0xff] %v3574_v39  ;;  %4536 = vst [vmem:[#allocation8 + $0x10] sm:$0xff] %v3575_v2  ;;  %v3814_v7 = vcombine.low %v3758_v60, %v3774_v43  ;;  %v3815_v30 = vcombine.high %v3758_v60, %v3774_v43  ;;  %v3830_v52 = vcombine.low %v3765_v8, %v3781_v44 }
 0x30a   :  { %4538 = vst [vmem:[#allocation8 + $0x20] sm:$0xff] %v3576_v46  ;;  %4540 = vst [vmem:[#allocation8 + $0x30] sm:$0xff] %v3577_v19  ;;  %v3831_v5 = vcombine.high %v3765_v8, %v3781_v44  ;;  %v2991_v47 = vadd.f32 %v2990_v1, %v6508_v14  ;;  %v3080_v50 = vadd.f32 %v3079_v59, %v6510_v17  ;;  %v2998_v15 = vpop.f32.mrf.mxu0  ;;  %v3087_v48 = vpop.f32.mrf.mxu1 }
 0x30b   :  { %4542 = vst [vmem:[#allocation8 + $0x40] sm:$0xff] %v3578_v24  ;;  %4544 = vst [vmem:[#allocation8 + $0x50] sm:$0xff] %v3579_v38  ;;  %v2993_v61 = vadd.f32 %v2992_v27, %v6512_v18  ;;  %v3082_v28 = vadd.f32 %v3081_v3, %v6515_v26  ;;  %v3822_v39 = vrot.slane %v3814_v7, %v5656_v40 }
 0x30c   :  { %4546 = vst [vmem:[#allocation8 + $0x60] sm:$0xff] %v3580_v58  ;;  %4548 = vst [vmem:[#allocation8 + $0x70] sm:$0xff] %v3581_v22  ;;  %v3829_v60 = vrot.slane %v3815_v30, %v5656_v40  ;;  %v3838_v8 = vrot.slane %v3830_v52, %v5656_v40  ;;  %v3845_v43 = vrot.slane %v3831_v5, %v5656_v40  ;;  %v6631_v19 = vpop.f32.mrf.mxu0  ;;  %v6633_v59 = vpop.f32.mrf.mxu1 }
 0x30d   :  { %v4022_v44 = vcombine.low %v2991_v47, %v3080_v50  ;;  %v4023_v2 = vcombine.high %v2991_v47, %v3080_v50  ;;  %v4038_v46 = vcombine.low %v2993_v61, %v3082_v28  ;;  %v4039_v1 = vcombine.high %v2993_v61, %v3082_v28 }
 0x30e   :  { %v3846_v27 = vcombine.low %v6548_v25, %v3822_v39  ;;  %v3847_v3 = vcombine.high %v6548_v25, %v3822_v39  ;;  %v3848_v24 = vcombine.low %v6551_v29, %v3829_v60  ;;  %v3849_v38 = vcombine.high %v6551_v29, %v3829_v60  ;;  %v3158_v30 = vpop.f32.mrf.mxu0  ;;  %v3247_v52 = vpop.f32.mrf.mxu1 }
 0x30f   :  { %v3850_v58 = vcombine.low %v6560_v11, %v3838_v8  ;;  %v3851_v5 = vcombine.high %v6560_v11, %v3838_v8  ;;  %v3852_v22 = vcombine.low %v6563_v20, %v3845_v43  ;;  %v3853_v7 = vcombine.high %v6563_v20, %v3845_v43 }
 0x310   :  { %4550 = vst [vmem:[#allocation8 + $0x80] sm:$0xff] %v3846_v27  ;;  %4552 = vst [vmem:[#allocation8 + $0x90] sm:$0xff] %v3847_v3  ;;  %v4030_v25 = vrot.slane %v4022_v44, %v5409_v4  ;;  %v4037_v47 = vrot.slane %v4023_v2, %v5409_v4  ;;  %v4046_v29 = vrot.slane %v4038_v46, %v5409_v4 }
 0x311   :  { %4554 = vst [vmem:[#allocation8 + $0xa0] sm:$0xff] %v3848_v24  ;;  %4556 = vst [vmem:[#allocation8 + $0xb0] sm:$0xff] %v3849_v38  ;;  %v4053_v50 = vrot.slane %v4039_v1, %v5409_v4  ;;  %v2997_v11 = vadd.f32 %v2996_v56, %v6519_v9  ;;  %v3086_v20 = vadd.f32 %v3085_v16, %v6521_v34 }
 0x312   :  { %4558 = vst [vmem:[#allocation8 + $0xc0] sm:$0xff] %v3850_v58  ;;  %4560 = vst [vmem:[#allocation8 + $0xd0] sm:$0xff] %v3851_v5  ;;  %v2999_v61 = vadd.f32 %v2998_v15, %v6523_v32  ;;  %v3088_v28 = vadd.f32 %v3087_v48, %v6525_v41  ;;  %v4086_v39 = vcombine.low %v4030_v25, %v4046_v29  ;;  %v6651_v27 = vpop.f32.mrf.mxu0  ;;  %v6653_v3 = vpop.f32.mrf.mxu1 }
 0x313   :  { %4562 = vst [vmem:[#allocation8 + $0xe0] sm:$0xff] %v3852_v22  ;;  %4564 = vst [vmem:[#allocation8 + $0xf0] sm:$0xff] %v3853_v7  ;;  %v4087_v60 = vcombine.high %v4030_v25, %v4046_v29  ;;  %v4102_v8 = vcombine.low %v4037_v47, %v4053_v50  ;;  %v4103_v43 = vcombine.high %v4037_v47, %v4053_v50 }
 0x314   :  { %v4294_v44 = vcombine.low %v2997_v11, %v3086_v20  ;;  %v4295_v2 = vcombine.high %v2997_v11, %v3086_v20  ;;  %v4310_v46 = vcombine.low %v2999_v61, %v3088_v28  ;;  %v4311_v1 = vcombine.high %v2999_v61, %v3088_v28  ;;  %v6663_v22 = vpop.f32.mrf.mxu0  ;;  %v6665_v7 = vpop.f32.mrf.mxu1 }
 0x315   :  { %v4094_v56 = vrot.slane %v4086_v39, %v5656_v40  ;;  %v4101_v16 = vrot.slane %v4087_v60, %v5656_v40  ;;  %v4110_v15 = vrot.slane %v4102_v8, %v5656_v40  ;;  %v4117_v48 = vrot.slane %v4103_v43, %v5656_v40 }
 0x316   :  { %v4302_v24 = vrot.slane %v4294_v44, %v5409_v4  ;;  %v4309_v38 = vrot.slane %v4295_v2, %v5409_v4  ;;  %v4318_v58 = vrot.slane %v4310_v46, %v5409_v4  ;;  %v4325_v5 = vrot.slane %v4311_v1, %v5409_v4 }
 0x317   :  { %v4118_v25 = vcombine.low %v6568_v49, %v4094_v56  ;;  %v4119_v47 = vcombine.high %v6568_v49, %v4094_v56  ;;  %v4120_v29 = vcombine.low %v6571_v62, %v4101_v16  ;;  %v4121_v50 = vcombine.high %v6571_v62, %v4101_v16  ;;  %v3168_v43 = vpop.f32.mrf.mxu0  ;;  %v3257_v44 = vpop.f32.mrf.mxu1 }
 0x318   :  { %v4122_v11 = vcombine.low %v6574_v12, %v4110_v15  ;;  %v4123_v20 = vcombine.high %v6574_v12, %v4110_v15  ;;  %v4124_v61 = vcombine.low %v6577_v37, %v4117_v48  ;;  %v4125_v28 = vcombine.high %v6577_v37, %v4117_v48 }
 0x319   :  { %4566 = vst [vmem:[#allocation8 + $0x100] sm:$0xff] %v4118_v25  ;;  %4568 = vst [vmem:[#allocation8 + $0x110] sm:$0xff] %v4119_v47  ;;  %v4358_v39 = vcombine.low %v4302_v24, %v4318_v58  ;;  %v4359_v60 = vcombine.high %v4302_v24, %v4318_v58  ;;  %v4374_v8 = vcombine.low %v4309_v38, %v4325_v5  ;;  %v3170_v15 = vpop.f32.mrf.mxu0  ;;  %v3259_v48 = vpop.f32.mrf.mxu1 }
 0x31a   :  { %4570 = vst [vmem:[#allocation8 + $0x120] sm:$0xff] %v4120_v29  ;;  %4572 = vst [vmem:[#allocation8 + $0x130] sm:$0xff] %v4121_v50  ;;  %v4375_v49 = vcombine.high %v4309_v38, %v4325_v5  ;;  %v3157_v62 = vadd.f32 %v6631_v19, %v6301_v53  ;;  %v3246_v12 = vadd.f32 %v6633_v59, %v6383_v6 }
 0x31b   :  { %4574 = vst [vmem:[#allocation8 + $0x140] sm:$0xff] %v4122_v11  ;;  %4576 = vst [vmem:[#allocation8 + $0x150] sm:$0xff] %v4123_v20  ;;  %v3159_v37 = vadd.f32 %v3158_v30, %v6395_v23  ;;  %v3248_v2 = vadd.f32 %v3247_v52, %v6397_v63  ;;  %v4366_v46 = vrot.slane %v4358_v39, %v5656_v40  ;;  %v3174_v30 = vpop.f32.mrf.mxu0  ;;  %v3263_v52 = vpop.f32.mrf.mxu1 }
 0x31c   :  { %4578 = vst [vmem:[#allocation8 + $0x160] sm:$0xff] %v4124_v61  ;;  %4580 = vst [vmem:[#allocation8 + $0x170] sm:$0xff] %v4125_v28  ;;  %v4373_v1 = vrot.slane %v4359_v60, %v5656_v40  ;;  %v4382_v56 = vrot.slane %v4374_v8, %v5656_v40  ;;  %v4389_v16 = vrot.slane %v4375_v49, %v5656_v40 }
 0x31d   :  { %v3582_v24 = vcombine.low %v3157_v62, %v3246_v12  ;;  %v3583_v38 = vcombine.high %v3157_v62, %v3246_v12  ;;  %v3598_v53 = vcombine.low %v3159_v37, %v3248_v2  ;;  %v3599_v19 = vcombine.high %v3159_v37, %v3248_v2  ;;  %v3176_v11 = vpop.f32.mrf.mxu0  ;;  %v3265_v20 = vpop.f32.mrf.mxu1 }
 0x31e   :  { %v4390_v6 = vcombine.low %v6588_v13, %v4366_v46  ;;  %v4391_v23 = vcombine.high %v6588_v13, %v4366_v46  ;;  %v4392_v63 = vcombine.low %v6591_v57, %v4373_v1  ;;  %v4393_v59 = vcombine.high %v6591_v57, %v4373_v1 }
 0x31f   :  { %v4394_v58 = vcombine.low %v6594_v35, %v4382_v56  ;;  %v4395_v5 = vcombine.high %v6594_v35, %v4382_v56  ;;  %v4396_v25 = vcombine.low %v6597_v0, %v4389_v16  ;;  %v4397_v47 = vcombine.high %v6597_v0, %v4389_v16  ;;  %v3334_v46 = vpop.f32.mrf.mxu0  ;;  %v3423_v1 = vpop.f32.mrf.mxu1 }
 0x320   :  { %4582 = vst [vmem:[#allocation8 + $0x180] sm:$0xff] %v4390_v6  ;;  %4584 = vst [vmem:[#allocation8 + $0x190] sm:$0xff] %v4391_v23  ;;  %v3590_v13 = vrot.slane %v3582_v24, %v5409_v4  ;;  %v3597_v29 = vrot.slane %v3583_v38, %v5409_v4  ;;  %v3606_v57 = vrot.slane %v3598_v53, %v5409_v4 }
 0x321   :  { %4586 = vst [vmem:[#allocation8 + $0x1a0] sm:$0xff] %v4392_v63  ;;  %4588 = vst [vmem:[#allocation8 + $0x1b0] sm:$0xff] %v4393_v59  ;;  %v3613_v50 = vrot.slane %v3599_v19, %v5409_v4  ;;  %v3163_v35 = vadd.f32 %v6651_v27, %v6407_v55  ;;  %v3252_v0 = vadd.f32 %v6653_v3, %v6409_v10 }
 0x322   :  { %4590 = vst [vmem:[#allocation8 + $0x1c0] sm:$0xff] %v4394_v58  ;;  %4592 = vst [vmem:[#allocation8 + $0x1d0] sm:$0xff] %v4395_v5  ;;  %v3165_v61 = vadd.f32 %v6663_v22, %v6411_v36  ;;  %v3254_v28 = vadd.f32 %v6665_v7, %v6413_v51  ;;  %v3646_v39 = vcombine.low %v3590_v13, %v3606_v57  ;;  %v6971_v7 = vld [vmem:[#allocation18_spill] sm:$0xff] }
 0x323   :  { %4594 = vst [vmem:[#allocation8 + $0x1e0] sm:$0xff] %v4396_v25  ;;  %4596 = vst [vmem:[#allocation8 + $0x1f0] sm:$0xff] %v4397_v47  ;;  %v3647_v60 = vcombine.high %v3590_v13, %v3606_v57  ;;  %v3662_v8 = vcombine.low %v3597_v29, %v3613_v50  ;;  %v3663_v49 = vcombine.high %v3597_v29, %v3613_v50  ;;  %v6972_v25 = vld [vmem:[#allocation20_spill] sm:$0xff]  ;;  %v6973_v13 = vld [vmem:[#allocation19_spill] sm:$0xff] }
 0x324   :  { %v3854_v62 = vcombine.low %v3163_v35, %v3252_v0  ;;  %v3855_v12 = vcombine.high %v3163_v35, %v3252_v0  ;;  %v3870_v37 = vcombine.low %v3165_v61, %v3254_v28  ;;  %v3871_v2 = vcombine.high %v3165_v61, %v3254_v28  ;;  %v6974_v57 = vld [vmem:[#allocation21_spill] sm:$0xff]  ;;  %v6975_v35 = vld [vmem:[#allocation12_spill] sm:$0xff] }
 0x325   :  { %v6706_v55 = vrot.slane %v3646_v39, %v5656_v40  ;;  %v6709_v10 = vrot.slane %v3647_v60, %v5656_v40  ;;  %v3169_v27 = vadd.f32 %v3168_v43, %v6431_v33  ;;  %v3258_v3 = vadd.f32 %v3257_v44, %v6433_v31  ;;  %v3336_v43 = vpop.f32.mrf.mxu0  ;;  %v3425_v31 = vpop.f32.mrf.mxu1 }
 0x326   :  { %v3878_v36 = vrot.slane %v3870_v37, %v5409_v4  ;;  %v3885_v51 = vrot.slane %v3871_v2, %v5409_v4  ;;  %v3171_v22 = vadd.f32 %v3170_v15, %v6435_v54  ;;  %v3260_v56 = vadd.f32 %v3259_v48, %v6971_v7 }
 0x327   :  { %v6718_v16 = vrot.slane %v3662_v8, %v5656_v40  ;;  %v6721_v24 = vrot.slane %v3663_v49, %v5656_v40  ;;  %v3862_v38 = vrot.slane %v3854_v62, %v5409_v4  ;;  %v3869_v53 = vrot.slane %v3855_v12, %v5409_v4  ;;  %v3340_v8 = vpop.f32.mrf.mxu0  ;;  %v3429_v49 = vpop.f32.mrf.mxu1 }
 0x328   :  { %v4126_v19 = vcombine.low %v3169_v27, %v3258_v3  ;;  %v4127_v6 = vcombine.high %v3169_v27, %v3258_v3  ;;  %v4142_v23 = vcombine.low %v3171_v22, %v3260_v56  ;;  %v4143_v33 = vcombine.high %v3171_v22, %v3260_v56  ;;  %v6976_v22 = vld [vmem:[#allocation13_spill] sm:$0xff]  ;;  %v6977_v56 = vld [vmem:[#allocation14_spill] sm:$0xff] }
 0x329   :  { %v3918_v44 = vcombine.low %v3862_v38, %v3878_v36  ;;  %v3919_v54 = vcombine.high %v3862_v38, %v3878_v36  ;;  %v3934_v15 = vcombine.low %v3869_v53, %v3885_v51  ;;  %v3935_v48 = vcombine.high %v3869_v53, %v3885_v51  ;;  %v6978_v53 = vld [vmem:[#allocation16_spill] sm:$0xff] }
 0x32a   :  { %v4134_v63 = vrot.slane %v4126_v19, %v5409_v4  ;;  %v4141_v59 = vrot.slane %v4127_v6, %v5409_v4  ;;  %v4150_v58 = vrot.slane %v4142_v23, %v5409_v4  ;;  %v4157_v5 = vrot.slane %v4143_v33, %v5409_v4  ;;  %v6979_v6 = vld [vmem:[#allocation15_spill] sm:$0xff]  ;;  %v3342_v33 = vpop.f32.mrf.mxu0 }
 0x32b   :  { %v3175_v47 = vadd.f32 %v3174_v30, %v6972_v25  ;;  %v3264_v29 = vadd.f32 %v3263_v52, %v6973_v13  ;;  %v3177_v50 = vadd.f32 %v3176_v11, %v6974_v57  ;;  %v3266_v0 = vadd.f32 %v3265_v20, %v6975_v35 }
 0x32c   :  { %v4190_v61 = vcombine.low %v4134_v63, %v4150_v58  ;;  %v4191_v28 = vcombine.high %v4134_v63, %v4150_v58  ;;  %v4206_v39 = vcombine.low %v4141_v59, %v4157_v5  ;;  %v4207_v60 = vcombine.high %v4141_v59, %v4157_v5 }
 0x32d   :  { %v4398_v62 = vcombine.low %v3175_v47, %v3264_v29  ;;  %v4399_v12 = vcombine.high %v3175_v47, %v3264_v29  ;;  %v4414_v37 = vcombine.low %v3177_v50, %v3266_v0  ;;  %v4415_v2 = vcombine.high %v3177_v50, %v3266_v0  ;;  %v3346_v50 = vpop.f32.mrf.mxu0 }
 0x32e   :  { %v6734_v36 = vrot.slane %v3918_v44, %v5656_v40  ;;  %v6737_v30 = vrot.slane %v3919_v54, %v5656_v40  ;;  %v6740_v52 = vrot.slane %v3934_v15, %v5656_v40  ;;  %v6743_v11 = vrot.slane %v3935_v48, %v5656_v40  ;;  %v3431_v44 = vpop.f32.mrf.mxu1 }
 0x32f   :  { %v6746_v20 = vrot.slane %v4190_v61, %v5656_v40  ;;  %v6749_v51 = vrot.slane %v4191_v28, %v5656_v40  ;;  %v6752_v27 = vrot.slane %v4414_v37, %v5409_v4  ;;  %v6755_v3 = vrot.slane %v4415_v2, %v5409_v4 }
 0x330   :  { %v3335_v7 = vadd.f32 %v3334_v46, %v6976_v22  ;;  %v3424_v38 = vadd.f32 %v3423_v1, %v6977_v56  ;;  %v3337_v19 = vadd.f32 %v3336_v43, %v6978_v53  ;;  %v3426_v23 = vadd.f32 %v3425_v31, %v6979_v6  ;;  %v3435_v35 = vpop.f32.mrf.mxu1 }
 0x331   :  { %v6762_v54 = vrot.slane %v4206_v39, %v5656_v40  ;;  %v6765_v15 = vrot.slane %v4207_v60, %v5656_v40  ;;  %v6768_v48 = vrot.slane %v4398_v62, %v5409_v4  ;;  %v6771_v63 = vrot.slane %v4399_v12, %v5409_v4  ;;  %v6980_v39 = vld [vmem:[#allocation17_spill] sm:$0xff] }
 0x332   :  { %v3614_v46 = vcombine.low %v3335_v7, %v3424_v38  ;;  %v3615_v1 = vcombine.high %v3335_v7, %v3424_v38  ;;  %v3630_v59 = vcombine.low %v3337_v19, %v3426_v23  ;;  %v3631_v43 = vcombine.high %v3337_v19, %v3426_v23 }
 0x333   :  { %v4462_v31 = vcombine.low %v6768_v48, %v6752_v27  ;;  %v4463_v58 = vcombine.high %v6768_v48, %v6752_v27  ;;  %v4478_v5 = vcombine.low %v6771_v63, %v6755_v3  ;;  %v4479_v25 = vcombine.high %v6771_v63, %v6755_v3 }
 0x334   :  { %v3622_v47 = vrot.slane %v3614_v46, %v5409_v4  ;;  %v3629_v13 = vrot.slane %v3615_v1, %v5409_v4  ;;  %v3638_v29 = vrot.slane %v3630_v59, %v5409_v4  ;;  %v3645_v57 = vrot.slane %v3631_v43, %v5409_v4 }
 0x335   :  { %v3341_v0 = vadd.f32 %v3340_v8, %v6481_v42  ;;  %v3430_v61 = vadd.f32 %v3429_v49, %v6483_v21  ;;  %v3343_v28 = vadd.f32 %v3342_v33, %v6485_v45  ;;  %v3432_v60 = vadd.f32 %v3431_v44, %v6980_v39  ;;  %v3348_v8 = vpop.f32.mrf.mxu0  ;;  %v3437_v45 = vpop.f32.mrf.mxu1 }
 0x336   :  { %v3678_v62 = vcombine.low %v3622_v47, %v3638_v29  ;;  %v3679_v12 = vcombine.high %v3622_v47, %v3638_v29  ;;  %v3694_v37 = vcombine.low %v3629_v13, %v3645_v57  ;;  %v3695_v2 = vcombine.high %v3629_v13, %v3645_v57 }
 0x337   :  { %v3886_v22 = vcombine.low %v3341_v0, %v3430_v61  ;;  %v3887_v7 = vcombine.high %v3341_v0, %v3430_v61  ;;  %v3902_v56 = vcombine.low %v3343_v28, %v3432_v60  ;;  %v3903_v38 = vcombine.high %v3343_v28, %v3432_v60  ;;  %v3352_v28 = vpop.f32.mrf.mxu0  ;;  %v3441_v39 = vpop.f32.mrf.mxu1 }
 0x338   :  { %v3686_v53 = vrot.slane %v3678_v62, %v5656_v40  ;;  %v3693_v19 = vrot.slane %v3679_v12, %v5656_v40  ;;  %v3702_v42 = vrot.slane %v3694_v37, %v5656_v40  ;;  %v3709_v21 = vrot.slane %v3695_v2, %v5656_v40 }
 0x339   :  { %v3894_v49 = vrot.slane %v3886_v22, %v5409_v4  ;;  %v3901_v6 = vrot.slane %v3887_v7, %v5409_v4  ;;  %v3910_v23 = vrot.slane %v3902_v56, %v5409_v4  ;;  %v3917_v33 = vrot.slane %v3903_v38, %v5409_v4 }
 0x33a   :  { %v3710_v44 = vcombine.low %v6706_v55, %v3686_v53  ;;  %v3711_v46 = vcombine.high %v6706_v55, %v3686_v53  ;;  %v3712_v1 = vcombine.low %v6709_v10, %v3693_v19  ;;  %v3713_v59 = vcombine.high %v6709_v10, %v3693_v19 }
 0x33b   :  { %v3714_v43 = vcombine.low %v6718_v16, %v3702_v42  ;;  %v3715_v47 = vcombine.high %v6718_v16, %v3702_v42  ;;  %v3716_v13 = vcombine.low %v6721_v24, %v3709_v21  ;;  %v3717_v29 = vcombine.high %v6721_v24, %v3709_v21 }
 0x33c   :  { %4535 = vst [vmem:[#allocation8 + $0x8] sm:$0xff] %v3710_v44  ;;  %4537 = vst [vmem:[#allocation8 + $0x18] sm:$0xff] %v3711_v46  ;;  %v3950_v57 = vcombine.low %v3894_v49, %v3910_v23  ;;  %v3951_v0 = vcombine.high %v3894_v49, %v3910_v23  ;;  %v3966_v61 = vcombine.low %v3901_v6, %v3917_v33 }
 0x33d   :  { %4539 = vst [vmem:[#allocation8 + $0x28] sm:$0xff] %v3712_v1  ;;  %4541 = vst [vmem:[#allocation8 + $0x38] sm:$0xff] %v3713_v59  ;;  %v3967_v55 = vcombine.high %v3901_v6, %v3917_v33  ;;  %v3347_v10 = vadd.f32 %v3346_v50, %v6508_v14  ;;  %v3436_v16 = vadd.f32 %v3435_v35, %v6510_v17  ;;  %v3354_v50 = vpop.f32.mrf.mxu0  ;;  %v3443_v35 = vpop.f32.mrf.mxu1 }
 0x33e   :  { %4543 = vst [vmem:[#allocation8 + $0x48] sm:$0xff] %v3714_v43  ;;  %4545 = vst [vmem:[#allocation8 + $0x58] sm:$0xff] %v3715_v47  ;;  %v3349_v24 = vadd.f32 %v3348_v8, %v6512_v18  ;;  %v3438_v60 = vadd.f32 %v3437_v45, %v6515_v26  ;;  %v3958_v62 = vrot.slane %v3950_v57, %v5656_v40 }
 0x33f   :  { %4547 = vst [vmem:[#allocation8 + $0x68] sm:$0xff] %v3716_v13  ;;  %4549 = vst [vmem:[#allocation8 + $0x78] sm:$0xff] %v3717_v29  ;;  %v3965_v12 = vrot.slane %v3951_v0, %v5656_v40  ;;  %v3974_v37 = vrot.slane %v3966_v61, %v5656_v40  ;;  %v3981_v2 = vrot.slane %v3967_v55, %v5656_v40 }
 0x340   :  { %v4158_v22 = vcombine.low %v3347_v10, %v3436_v16  ;;  %v4159_v7 = vcombine.high %v3347_v10, %v3436_v16  ;;  %v4174_v56 = vcombine.low %v3349_v24, %v3438_v60  ;;  %v4175_v38 = vcombine.high %v3349_v24, %v3438_v60 }
 0x341   :  { %v3982_v14 = vcombine.low %v6734_v36, %v3958_v62  ;;  %v3983_v17 = vcombine.high %v6734_v36, %v3958_v62  ;;  %v3984_v18 = vcombine.low %v6737_v30, %v3965_v12  ;;  %v3985_v26 = vcombine.high %v6737_v30, %v3965_v12 }
 0x342   :  { %v3986_v53 = vcombine.low %v6740_v52, %v3974_v37  ;;  %v3987_v19 = vcombine.high %v6740_v52, %v3974_v37  ;;  %v3988_v42 = vcombine.low %v6743_v11, %v3981_v2  ;;  %v3989_v21 = vcombine.high %v6743_v11, %v3981_v2 }
 0x343   :  { %4551 = vst [vmem:[#allocation8 + $0x88] sm:$0xff] %v3982_v14  ;;  %4553 = vst [vmem:[#allocation8 + $0x98] sm:$0xff] %v3983_v17  ;;  %v4166_v36 = vrot.slane %v4158_v22, %v5409_v4  ;;  %v4173_v8 = vrot.slane %v4159_v7, %v5409_v4  ;;  %v4182_v30 = vrot.slane %v4174_v56, %v5409_v4 }
 0x344   :  { %4555 = vst [vmem:[#allocation8 + $0xa8] sm:$0xff] %v3984_v18  ;;  %4557 = vst [vmem:[#allocation8 + $0xb8] sm:$0xff] %v3985_v26  ;;  %v4189_v45 = vrot.slane %v4175_v38, %v5409_v4  ;;  %v3353_v52 = vadd.f32 %v3352_v28, %v6519_v9  ;;  %v3442_v11 = vadd.f32 %v3441_v39, %v6521_v34 }
 0x345   :  { %4559 = vst [vmem:[#allocation8 + $0xc8] sm:$0xff] %v3986_v53  ;;  %4561 = vst [vmem:[#allocation8 + $0xd8] sm:$0xff] %v3987_v19  ;;  %v3355_v49 = vadd.f32 %v3354_v50, %v6523_v32  ;;  %v3444_v6 = vadd.f32 %v3443_v35, %v6525_v41  ;;  %v4222_v23 = vcombine.low %v4166_v36, %v4182_v30 }
 0x346   :  { %4563 = vst [vmem:[#allocation8 + $0xe8] sm:$0xff] %v3988_v42  ;;  %4565 = vst [vmem:[#allocation8 + $0xf8] sm:$0xff] %v3989_v21  ;;  %v4223_v33 = vcombine.high %v4166_v36, %v4182_v30  ;;  %v4238_v44 = vcombine.low %v4173_v8, %v4189_v45  ;;  %v4239_v46 = vcombine.high %v4173_v8, %v4189_v45 }
 0x347   :  { %v4430_v1 = vcombine.low %v3353_v52, %v3442_v11  ;;  %v4431_v59 = vcombine.high %v3353_v52, %v3442_v11  ;;  %v4446_v43 = vcombine.low %v3355_v49, %v3444_v6  ;;  %v4447_v47 = vcombine.high %v3355_v49, %v3444_v6 }
 0x348   :  { %v4230_v13 = vrot.slane %v4222_v23, %v5656_v40  ;;  %v4237_v29 = vrot.slane %v4223_v33, %v5656_v40  ;;  %v4246_v9 = vrot.slane %v4238_v44, %v5656_v40  ;;  %v4253_v34 = vrot.slane %v4239_v46, %v5656_v40 }
 0x349   :  { %v4438_v32 = vrot.slane %v4430_v1, %v5409_v4  ;;  %v4445_v41 = vrot.slane %v4431_v59, %v5409_v4  ;;  %v4454_v57 = vrot.slane %v4446_v43, %v5409_v4  ;;  %v4461_v0 = vrot.slane %v4447_v47, %v5409_v4 }
 0x34a   :  { %v4254_v61 = vcombine.low %v6746_v20, %v4230_v13  ;;  %v4255_v55 = vcombine.high %v6746_v20, %v4230_v13  ;;  %v4256_v28 = vcombine.low %v6749_v51, %v4237_v29  ;;  %v4257_v39 = vcombine.high %v6749_v51, %v4237_v29 }
 0x34b   :  { %v4258_v10 = vcombine.low %v6762_v54, %v4246_v9  ;;  %v4259_v16 = vcombine.high %v6762_v54, %v4246_v9  ;;  %v4260_v24 = vcombine.low %v6765_v15, %v4253_v34  ;;  %v4261_v60 = vcombine.high %v6765_v15, %v4253_v34 }
 0x34c   :  { %4567 = vst [vmem:[#allocation8 + $0x108] sm:$0xff] %v4254_v61  ;;  %4569 = vst [vmem:[#allocation8 + $0x118] sm:$0xff] %v4255_v55  ;;  %v4494_v4 = vcombine.low %v4438_v32, %v4454_v57  ;;  %v4495_v62 = vcombine.high %v4438_v32, %v4454_v57  ;;  %v4510_v12 = vcombine.low %v4445_v41, %v4461_v0 }
 0x34d   :  { %4571 = vst [vmem:[#allocation8 + $0x128] sm:$0xff] %v4256_v28  ;;  %4573 = vst [vmem:[#allocation8 + $0x138] sm:$0xff] %v4257_v39  ;;  %v4511_v20 = vcombine.high %v4445_v41, %v4461_v0  ;;  %v4470_v51 = vrot.slane %v4462_v31, %v5656_v40  ;;  %v4477_v54 = vrot.slane %v4463_v58, %v5656_v40 }
 0x34e   :  { %4575 = vst [vmem:[#allocation8 + $0x148] sm:$0xff] %v4258_v10  ;;  %4577 = vst [vmem:[#allocation8 + $0x158] sm:$0xff] %v4259_v16  ;;  %v4502_v15 = vrot.slane %v4494_v4, %v5656_v40  ;;  %v4509_v37 = vrot.slane %v4495_v62, %v5656_v40  ;;  %v4518_v2 = vrot.slane %v4510_v12, %v5656_v40 }
 0x34f   :  { %4579 = vst [vmem:[#allocation8 + $0x168] sm:$0xff] %v4260_v24  ;;  %4581 = vst [vmem:[#allocation8 + $0x178] sm:$0xff] %v4261_v60  ;;  %v4525_v22 = vrot.slane %v4511_v20, %v5656_v40  ;;  %v4486_v27 = vrot.slane %v4478_v5, %v5656_v40  ;;  %v4493_v48 = vrot.slane %v4479_v25, %v5656_v40 }
 0x350   :  { %v4526_v31 = vcombine.low %v4470_v51, %v4502_v15  ;;  %v4527_v58 = vcombine.high %v4470_v51, %v4502_v15  ;;  %v4528_v7 = vcombine.low %v4477_v54, %v4509_v37  ;;  %v4529_v56 = vcombine.high %v4477_v54, %v4509_v37 }
 0x351   :  { %v4530_v38 = vcombine.low %v4486_v27, %v4518_v2  ;;  %v4531_v14 = vcombine.high %v4486_v27, %v4518_v2  ;;  %v4532_v17 = vcombine.low %v4493_v48, %v4525_v22  ;;  %v4533_v18 = vcombine.high %v4493_v48, %v4525_v22 }
 0x352   :  { %4583 = vst [vmem:[#allocation8 + $0x188] sm:$0xff] %v4526_v31  ;;  %4585 = vst [vmem:[#allocation8 + $0x198] sm:$0xff] %v4527_v58 }
 0x353   :  { %4587 = vst [vmem:[#allocation8 + $0x1a8] sm:$0xff] %v4528_v7  ;;  %4589 = vst [vmem:[#allocation8 + $0x1b8] sm:$0xff] %v4529_v56 }
 0x354   :  { %4591 = vst [vmem:[#allocation8 + $0x1c8] sm:$0xff] %v4530_v38  ;;  %4593 = vst [vmem:[#allocation8 + $0x1d8] sm:$0xff] %v4531_v14 }
 0x355   :  { %4595 = vst [vmem:[#allocation8 + $0x1e8] sm:$0xff] %v4532_v17  ;;  %4597 = vst [vmem:[#allocation8 + $0x1f8] sm:$0xff] %v4533_v18 }
 0x356   :  { %5171 = shalt.err (!%p5168_p0)
}
 0x357   :  { %4609 = dma.vmem_to_hbm [thread:$0]  %s4604_s20, 8192, %s6875_s4, [#allocation5], %s5187_s18, %s5187_s18, %s5188_s19  }
 0x358   :  { %5184 = dma.done.wait [#allocation5], 8192  }
 0x359   :  { %5185 = vsyncadd [#allocation5], 4294959104 }
 0x35a   :  { %4613 = vsyncpa [#allocation4], 1 }
 0x35b   :  { %4614 = vsyncpa [#allocation7], 1 }
 0x35c   :  { %4615 = vsyncpa [#allocation5], 1 }

</bundles_post_ra>
